<compile_context>
chip_gen: v6e
topology: v6e:2x2x1
jax: 0.10.0
libtpu: 0.0.40
codegen_flags: <defaults>
</compile_context>

<pallas_src>
import functools

import jax
import jax.numpy as jnp
from jax.experimental import pallas as pl
from jax.experimental.pallas import tpu as pltpu


def basic_block_kernel(x_ref, w1_ref, b1_ref, w2_ref, b2_ref,
                       fc1w_ref, fc1b_ref, fc2w_ref, fc2b_ref,
                       o_ref, cols_ref, *, H, W):
    NB, C, HW = x_ref.shape          # (batch_block, C, H*W), channel-major

    # ---- tap validity masks (shared by both convs and all images) -----------
    pos = jax.lax.broadcasted_iota(jnp.int32, (1, HW), 1)
    if (W & (W - 1)) == 0:                       # power-of-two W: cheap AND
        col = jnp.bitwise_and(pos, W - 1)
    else:
        col = pos % W
    row_ok = {-1: pos >= W, 0: None, 1: pos < (H - 1) * W}
    col_ok = {-1: col >= 1, 0: None, 1: col < (W - 1)}

    taps = [(dy, dx) for dy in (-1, 0, 1) for dx in (-1, 0, 1)]
    masks = []
    for dy, dx in taps:
        m = row_ok[dy]
        if col_ok[dx] is not None:
            m = col_ok[dx] if m is None else jnp.logical_and(m, col_ok[dx])
        masks.append(m)

    def conv3x3_bias(x_chw, w_ref, b_ref):
        """3x3 'SAME' conv + per-channel bias in channel-major (C, HW) layout.

        Taps are lane-rolled views of x (result[p] = x[p + dy*W + dx], border
        pixels masked to zero) written into the (9C, HW) scratch, then a single
        (Cout, 9Cin) @ (9Cin, HW) MXU matmul.  BN scale is pre-folded into w.
        """
        for t, (dy, dx) in enumerate(taps):
            off = dy * W + dx
            if off == 0:
                tap = x_chw
            else:
                tap = pltpu.roll(x_chw, (-off) % HW, axis=1)   # XLU lane roll
            if masks[t] is not None:
                tap = jnp.where(masks[t], tap, 0.0)
            cols_ref[t * C:(t + 1) * C, :] = tap.astype(cols_ref.dtype)
        acc = jnp.dot(w_ref[...], cols_ref[...],
                      preferred_element_type=jnp.float32)       # (C, HW)
        return acc + b_ref[...]                                 # bias (C,1)

    inv_hw = 1.0 / HW
    for b in range(NB):                  # static unroll over the batch block
        x_chw = x_ref[b]                                        # (C, HW)

        # conv1 + bn1 (folded) + relu
        y1 = jnp.maximum(conv3x3_bias(x_chw, w1_ref, b1_ref), 0.0)
        # conv2 + bn2 (folded)
        y2 = conv3x3_bias(y1, w2_ref, b2_ref)                   # (C, HW)

        # ---- SE: global avg pool -> 1x1 -> relu -> 1x1 -> sigmoid ----------
        # Done on VPU (broadcast multiplies) + XLU (reductions): cmid is tiny.
        pooled = jnp.sum(y2, axis=1, keepdims=True) * inv_hw            # (C,1)
        h1 = jnp.maximum(
            jnp.sum(fc1w_ref[...] * pooled, axis=0, keepdims=True)
            + fc1b_ref[...], 0.0)                                       # (1,cmid)
        se = jax.nn.sigmoid(
            jnp.sum(fc2w_ref[...] * h1, axis=1, keepdims=True)
            + fc2b_ref[...])                                            # (C,1)

        # channel scale + identity skip + final relu; store stays channel-major
        o_ref[b] = jnp.maximum(y2 * se + x_chw, 0.0).astype(o_ref.dtype)


def basic_block_forward(x_nchw, params, *, batch_block=1,
                        mxu_dtype=jnp.float32):
    """Full BasicBlock forward (stride=1, in_ch==out_ch => identity skip)."""
    N, C, H, W = x_nchw.shape
    HW = H * W
    cmid = params["fc1_w"].shape[-1]
    assert N % batch_block == 0, "batch_block must divide N"

    x_flat = x_nchw.reshape(N, C, HW)        # free reshape, stays channel-major

    # Channel-major conv weights (Cout, 9*Cin) with BN scale folded in.
    s1 = params["bn1_scale"].reshape(C, 1)
    s2 = params["bn2_scale"].reshape(C, 1)
    w1m = (params["w1"].reshape(9 * C, C).T * s1).astype(mxu_dtype)
    w2m = (params["w2"].reshape(9 * C, C).T * s2).astype(mxu_dtype)
    b1 = params["bn1_bias"].reshape(C, 1)
    b2 = params["bn2_bias"].reshape(C, 1)
    fc1w = params["fc1_w"]                        # (C, cmid)
    fc1b = params["fc1_b"].reshape(1, cmid)       # (1, cmid)
    fc2w = params["fc2_w"].T                      # (C, cmid)
    fc2b = params["fc2_b"].reshape(C, 1)          # (C, 1)

    kernel = functools.partial(basic_block_kernel, H=H, W=W)

    out_flat = pl.pallas_call(
        kernel,
        out_shape=jax.ShapeDtypeStruct((N, C, HW), jnp.float32),
        grid_spec=pltpu.PrefetchScalarGridSpec(
            num_scalar_prefetch=0,
            grid=(N // batch_block,),
            in_specs=[
                pl.BlockSpec((batch_block, C, HW), lambda n: (n, 0, 0)),  # x
                pl.BlockSpec((C, 9 * C), lambda n: (0, 0)),   # w1 (scale folded)
                pl.BlockSpec((C, 1), lambda n: (0, 0)),       # bn1 bias
                pl.BlockSpec((C, 9 * C), lambda n: (0, 0)),   # w2 (scale folded)
                pl.BlockSpec((C, 1), lambda n: (0, 0)),       # bn2 bias
                pl.BlockSpec((C, cmid), lambda n: (0, 0)),    # SE fc1 w
                pl.BlockSpec((1, cmid), lambda n: (0, 0)),    # SE fc1 b
                pl.BlockSpec((C, cmid), lambda n: (0, 0)),    # SE fc2 w (T)
                pl.BlockSpec((C, 1), lambda n: (0, 0)),       # SE fc2 b
            ],
            out_specs=pl.BlockSpec((batch_block, C, HW), lambda n: (n, 0, 0)),
            scratch_shapes=[pltpu.VMEM((9 * C, HW), mxu_dtype)],  # im2col taps
        ),
        compiler_params=pltpu.CompilerParams(
            dimension_semantics=("parallel",)),
    )(x_flat, w1m, b1, w2m, b2, fc1w, fc1b, fc2w, fc2b)

    return out_flat.reshape(N, C, H, W)


# ----------------------------------------------------------------------------
# Deterministic parameter construction (synthetic; BN folded to scale/bias)
# ----------------------------------------------------------------------------
def make_params(key, c, reduction=16, eps=1e-5):
    cmid = c // reduction
    ks = jax.random.split(key, 12)

    def fold_bn(gamma, beta, mean, var):
        scale = gamma / jnp.sqrt(var + eps)
        return scale, beta - mean * scale

    w1 = jax.random.normal(ks[0], (9, c, c), jnp.float32) * 0.08
    w2 = jax.random.normal(ks[1], (9, c, c), jnp.float32) * 0.08
    g1 = jax.random.uniform(ks[2], (c,), jnp.float32, 0.5, 1.5)
    b1 = jax.random.normal(ks[3], (c,), jnp.float32) * 0.1
    m1 = jax.random.normal(ks[4], (c,), jnp.float32) * 0.1
    v1 = jax.random.uniform(ks[5], (c,), jnp.float32, 0.5, 1.5)
    g2 = jax.random.uniform(ks[6], (c,), jnp.float32, 0.5, 1.5)
    b2 = jax.random.normal(ks[7], (c,), jnp.float32) * 0.1
    m2 = jax.random.normal(ks[8], (c,), jnp.float32) * 0.1
    v2 = jax.random.uniform(ks[9], (c,), jnp.float32, 0.5, 1.5)
    s1, bb1 = fold_bn(g1, b1, m1, v1)
    s2, bb2 = fold_bn(g2, b2, m2, v2)

    fc1_w = jax.random.normal(ks[10], (c, cmid), jnp.float32) * 0.2
    fc2_w = jax.random.normal(ks[11], (cmid, c), jnp.float32) * 0.2
    fc1_b = jnp.linspace(-0.1, 0.1, cmid, dtype=jnp.float32).reshape(1, cmid)
    fc2_b = jnp.linspace(-0.1, 0.1, c, dtype=jnp.float32).reshape(1, c)

    return dict(w1=w1, bn1_scale=s1.reshape(1, c), bn1_bias=bb1.reshape(1, c),
                w2=w2, bn2_scale=s2.reshape(1, c), bn2_bias=bb2.reshape(1, c),
                fc1_w=fc1_w, fc1_b=fc1_b, fc2_w=fc2_w, fc2_b=fc2_b)


# ----------------------------------------------------------------------------
# Pure-JAX reference (same math, XLA convs) for correctness check
# ----------------------------------------------------------------------------
def reference_forward(x_nchw, params):
    x = jnp.transpose(x_nchw, (0, 2, 3, 1))  # NHWC

    def conv(v, w9):
        w = w9.reshape(3, 3, w9.shape[1], w9.shape[2])
        return jax.lax.conv_general_dilated(
            v, w, (1, 1), "SAME", dimension_numbers=("NHWC", "HWIO", "NHWC"))

    out = conv(x, params["w1"]) * params["bn1_scale"] + params["bn1_bias"]
    out = jnp.maximum(out, 0.0)
    out = conv(out, params["w2"]) * params["bn2_scale"] + params["bn2_bias"]
    pooled = jnp.mean(out, axis=(1, 2))                                # (N, C)
    h1 = jnp.maximum(pooled @ params["fc1_w"] + params["fc1_b"], 0.0)
    s = jax.nn.sigmoid(h1 @ params["fc2_w"] + params["fc2_b"])         # (N, C)
    out = out * s[:, None, None, :] + x
    out = jnp.maximum(out, 0.0)
    return jnp.transpose(out, (0, 3, 1, 2))


if __name__ == "__main__":
    N, C, H, W = 2, 32, 16, 16   # in_channels == out_channels == 32, stride == 1
    key = jax.random.PRNGKey(0)
    kx, kp = jax.random.split(key)
    x = jax.random.normal(kx, (N, C, H, W), jnp.float32)
    params = make_params(kp, C, reduction=16)

    # batch_block=1 keeps grid=(2,) "parallel" -> both v7x TensorCores busy.
    out = jax.block_until_ready(jax.jit(basic_block_forward)(x, params))
    ref = jax.block_until_ready(reference_forward(x, params))

    assert out.shape == (N, C, H, W)
    err = jnp.max(jnp.abs(out - ref))
    assert jnp.allclose(out, ref, rtol=2e-4, atol=2e-4), f"max abs diff = {err}"
    print("KERNEL_OK")
</pallas_src>

<mosaic_0001>
module attributes {stable_mosaic.version = 11 : i64} {
  func.func @basic_block_kernel(%arg0: i32, %arg1: memref<1x32x256xf32, #tpu.memory_space<vmem>>, %arg2: memref<32x288xf32, #tpu.memory_space<vmem>>, %arg3: memref<32x1xf32, #tpu.memory_space<vmem>>, %arg4: memref<32x288xf32, #tpu.memory_space<vmem>>, %arg5: memref<32x1xf32, #tpu.memory_space<vmem>>, %arg6: memref<32x2xf32, #tpu.memory_space<vmem>>, %arg7: memref<1x2xf32, #tpu.memory_space<vmem>>, %arg8: memref<32x2xf32, #tpu.memory_space<vmem>>, %arg9: memref<32x1xf32, #tpu.memory_space<vmem>>, %arg10: memref<1x32x256xf32, #tpu.memory_space<vmem>>, %arg11: memref<288x256xf32, #tpu.memory_space<vmem>>) attributes {dimension_semantics = [#tpu.dimension_semantics<parallel>], iteration_bounds = array<i64: 2>, scalar_prefetch = 0 : i64, scratch_operands = 1 : i64, tpu.core_type = #tpu.core_type<tc>, window_params = [{transform_indices = @transform_0, window_bounds = array<i64: 1, 32, 256>}, {pipeline_mode = #tpu.pipeline_mode<synchronous>, transform_indices = @transform_1, window_bounds = array<i64: 32, 288>}, {pipeline_mode = #tpu.pipeline_mode<synchronous>, transform_indices = @transform_2, window_bounds = array<i64: 32, 1>}, {pipeline_mode = #tpu.pipeline_mode<synchronous>, transform_indices = @transform_3, window_bounds = array<i64: 32, 288>}, {pipeline_mode = #tpu.pipeline_mode<synchronous>, transform_indices = @transform_4, window_bounds = array<i64: 32, 1>}, {pipeline_mode = #tpu.pipeline_mode<synchronous>, transform_indices = @transform_5, window_bounds = array<i64: 32, 2>}, {pipeline_mode = #tpu.pipeline_mode<synchronous>, transform_indices = @transform_6, window_bounds = array<i64: 1, 2>}, {pipeline_mode = #tpu.pipeline_mode<synchronous>, transform_indices = @transform_7, window_bounds = array<i64: 32, 2>}, {pipeline_mode = #tpu.pipeline_mode<synchronous>, transform_indices = @transform_8, window_bounds = array<i64: 32, 1>}, {transform_indices = @transform_9, window_bounds = array<i64: 1, 32, 256>}]} {
    %0 = tpu.iota {dimensions = array<i32: 1>} : vector<1x256xi32>
    %c15_i32 = arith.constant 15 : i32
    %1 = vector.broadcast %c15_i32 : i32 to vector<1x256xi32>
    %2 = arith.andi %0, %1 : vector<1x256xi32>
    %c16_i32 = arith.constant 16 : i32
    %3 = vector.broadcast %c16_i32 : i32 to vector<1x256xi32>
    %4 = arith.cmpi sge, %0, %3 : vector<1x256xi32>
    %c240_i32 = arith.constant 240 : i32
    %5 = vector.broadcast %c240_i32 : i32 to vector<1x256xi32>
    %6 = arith.cmpi slt, %0, %5 : vector<1x256xi32>
    %c1_i32 = arith.constant 1 : i32
    %7 = vector.broadcast %c1_i32 : i32 to vector<1x256xi32>
    %8 = arith.cmpi sge, %2, %7 : vector<1x256xi32>
    %c15_i32_0 = arith.constant 15 : i32
    %9 = vector.broadcast %c15_i32_0 : i32 to vector<1x256xi32>
    %10 = arith.cmpi slt, %2, %9 : vector<1x256xi32>
    %11 = arith.andi %4, %8 : vector<1x256xi1>
    %12 = arith.andi %4, %10 : vector<1x256xi1>
    %13 = arith.andi %6, %8 : vector<1x256xi1>
    %14 = arith.andi %6, %10 : vector<1x256xi1>
    %c0 = arith.constant 0 : index
    %c0_1 = arith.constant 0 : index
    %c0_2 = arith.constant 0 : index
    %15 = vector.load %arg1[%c0, %c0_1, %c0_2] : memref<1x32x256xf32, #tpu.memory_space<vmem>>, vector<1x32x256xf32>
    %16 = vector.shape_cast %15 : vector<1x32x256xf32> to vector<32x256xf32>
    %c17_i32 = arith.constant 17 : i32
    %17 = tpu.dynamic_rotate %16 by %c17_i32 dim 1 : vector<32x256xf32>, i32 -> vector<32x256xf32>
    %cst = arith.constant 0.000000e+00 : f32
    %18 = vector.shape_cast %11 : vector<1x256xi1> to vector<1x256xi1>
    %19 = vector.broadcast %18 : vector<1x256xi1> to vector<32x256xi1>
    %20 = vector.broadcast %cst : f32 to vector<32x256xf32>
    %21 = arith.select %19, %17, %20 : vector<32x256xi1>, vector<32x256xf32>
    %c0_3 = arith.constant 0 : index
    %c0_4 = arith.constant 0 : index
    %22 = vector.load %arg11[%c0_3, %c0_4] : memref<288x256xf32, #tpu.memory_space<vmem>>, vector<32x256xf32>
    tpu.vector_store %arg11[%c0_3, %c0_4], %21 {strides = array<i32>} : memref<288x256xf32, #tpu.memory_space<vmem>>, vector<32x256xf32>,
    %c16_i32_5 = arith.constant 16 : i32
    %23 = tpu.dynamic_rotate %16 by %c16_i32_5 dim 1 : vector<32x256xf32>, i32 -> vector<32x256xf32>
    %cst_6 = arith.constant 0.000000e+00 : f32
    %24 = vector.shape_cast %4 : vector<1x256xi1> to vector<1x256xi1>
    %25 = vector.broadcast %24 : vector<1x256xi1> to vector<32x256xi1>
    %26 = vector.broadcast %cst_6 : f32 to vector<32x256xf32>
    %27 = arith.select %25, %23, %26 : vector<32x256xi1>, vector<32x256xf32>
    %c32 = arith.constant 32 : index
    %c0_7 = arith.constant 0 : index
    %28 = vector.load %arg11[%c32, %c0_7] : memref<288x256xf32, #tpu.memory_space<vmem>>, vector<32x256xf32>
    tpu.vector_store %arg11[%c32, %c0_7], %27 {strides = array<i32>} : memref<288x256xf32, #tpu.memory_space<vmem>>, vector<32x256xf32>,
    %c15_i32_8 = arith.constant 15 : i32
    %29 = tpu.dynamic_rotate %16 by %c15_i32_8 dim 1 : vector<32x256xf32>, i32 -> vector<32x256xf32>
    %cst_9 = arith.constant 0.000000e+00 : f32
    %30 = vector.shape_cast %12 : vector<1x256xi1> to vector<1x256xi1>
    %31 = vector.broadcast %30 : vector<1x256xi1> to vector<32x256xi1>
    %32 = vector.broadcast %cst_9 : f32 to vector<32x256xf32>
    %33 = arith.select %31, %29, %32 : vector<32x256xi1>, vector<32x256xf32>
    %c64 = arith.constant 64 : index
    %c0_10 = arith.constant 0 : index
    %34 = vector.load %arg11[%c64, %c0_10] : memref<288x256xf32, #tpu.memory_space<vmem>>, vector<32x256xf32>
    tpu.vector_store %arg11[%c64, %c0_10], %33 {strides = array<i32>} : memref<288x256xf32, #tpu.memory_space<vmem>>, vector<32x256xf32>,
    %c1_i32_11 = arith.constant 1 : i32
    %35 = tpu.dynamic_rotate %16 by %c1_i32_11 dim 1 : vector<32x256xf32>, i32 -> vector<32x256xf32>
    %cst_12 = arith.constant 0.000000e+00 : f32
    %36 = vector.shape_cast %8 : vector<1x256xi1> to vector<1x256xi1>
    %37 = vector.broadcast %36 : vector<1x256xi1> to vector<32x256xi1>
    %38 = vector.broadcast %cst_12 : f32 to vector<32x256xf32>
    %39 = arith.select %37, %35, %38 : vector<32x256xi1>, vector<32x256xf32>
    %c96 = arith.constant 96 : index
    %c0_13 = arith.constant 0 : index
    %40 = vector.load %arg11[%c96, %c0_13] : memref<288x256xf32, #tpu.memory_space<vmem>>, vector<32x256xf32>
    tpu.vector_store %arg11[%c96, %c0_13], %39 {strides = array<i32>} : memref<288x256xf32, #tpu.memory_space<vmem>>, vector<32x256xf32>,
    %c128 = arith.constant 128 : index
    %c0_14 = arith.constant 0 : index
    %41 = vector.load %arg11[%c128, %c0_14] : memref<288x256xf32, #tpu.memory_space<vmem>>, vector<32x256xf32>
    tpu.vector_store %arg11[%c128, %c0_14], %16 {strides = array<i32>} : memref<288x256xf32, #tpu.memory_space<vmem>>, vector<32x256xf32>,
    %c255_i32 = arith.constant 255 : i32
    %42 = tpu.dynamic_rotate %16 by %c255_i32 dim 1 : vector<32x256xf32>, i32 -> vector<32x256xf32>
    %cst_15 = arith.constant 0.000000e+00 : f32
    %43 = vector.shape_cast %10 : vector<1x256xi1> to vector<1x256xi1>
    %44 = vector.broadcast %43 : vector<1x256xi1> to vector<32x256xi1>
    %45 = vector.broadcast %cst_15 : f32 to vector<32x256xf32>
    %46 = arith.select %44, %42, %45 : vector<32x256xi1>, vector<32x256xf32>
    %c160 = arith.constant 160 : index
    %c0_16 = arith.constant 0 : index
    %47 = vector.load %arg11[%c160, %c0_16] : memref<288x256xf32, #tpu.memory_space<vmem>>, vector<32x256xf32>
    tpu.vector_store %arg11[%c160, %c0_16], %46 {strides = array<i32>} : memref<288x256xf32, #tpu.memory_space<vmem>>, vector<32x256xf32>,
    %c241_i32 = arith.constant 241 : i32
    %48 = tpu.dynamic_rotate %16 by %c241_i32 dim 1 : vector<32x256xf32>, i32 -> vector<32x256xf32>
    %cst_17 = arith.constant 0.000000e+00 : f32
    %49 = vector.shape_cast %13 : vector<1x256xi1> to vector<1x256xi1>
    %50 = vector.broadcast %49 : vector<1x256xi1> to vector<32x256xi1>
    %51 = vector.broadcast %cst_17 : f32 to vector<32x256xf32>
    %52 = arith.select %50, %48, %51 : vector<32x256xi1>, vector<32x256xf32>
    %c192 = arith.constant 192 : index
    %c0_18 = arith.constant 0 : index
    %53 = vector.load %arg11[%c192, %c0_18] : memref<288x256xf32, #tpu.memory_space<vmem>>, vector<32x256xf32>
    tpu.vector_store %arg11[%c192, %c0_18], %52 {strides = array<i32>} : memref<288x256xf32, #tpu.memory_space<vmem>>, vector<32x256xf32>,
    %c240_i32_19 = arith.constant 240 : i32
    %54 = tpu.dynamic_rotate %16 by %c240_i32_19 dim 1 : vector<32x256xf32>, i32 -> vector<32x256xf32>
    %cst_20 = arith.constant 0.000000e+00 : f32
    %55 = vector.shape_cast %6 : vector<1x256xi1> to vector<1x256xi1>
    %56 = vector.broadcast %55 : vector<1x256xi1> to vector<32x256xi1>
    %57 = vector.broadcast %cst_20 : f32 to vector<32x256xf32>
    %58 = arith.select %56, %54, %57 : vector<32x256xi1>, vector<32x256xf32>
    %c224 = arith.constant 224 : index
    %c0_21 = arith.constant 0 : index
    %59 = vector.load %arg11[%c224, %c0_21] : memref<288x256xf32, #tpu.memory_space<vmem>>, vector<32x256xf32>
    tpu.vector_store %arg11[%c224, %c0_21], %58 {strides = array<i32>} : memref<288x256xf32, #tpu.memory_space<vmem>>, vector<32x256xf32>,
    %c239_i32 = arith.constant 239 : i32
    %60 = tpu.dynamic_rotate %16 by %c239_i32 dim 1 : vector<32x256xf32>, i32 -> vector<32x256xf32>
    %cst_22 = arith.constant 0.000000e+00 : f32
    %61 = vector.shape_cast %14 : vector<1x256xi1> to vector<1x256xi1>
    %62 = vector.broadcast %61 : vector<1x256xi1> to vector<32x256xi1>
    %63 = vector.broadcast %cst_22 : f32 to vector<32x256xf32>
    %64 = arith.select %62, %60, %63 : vector<32x256xi1>, vector<32x256xf32>
    %c256 = arith.constant 256 : index
    %c0_23 = arith.constant 0 : index
    %65 = vector.load %arg11[%c256, %c0_23] : memref<288x256xf32, #tpu.memory_space<vmem>>, vector<32x256xf32>
    tpu.vector_store %arg11[%c256, %c0_23], %64 {strides = array<i32>} : memref<288x256xf32, #tpu.memory_space<vmem>>, vector<32x256xf32>,
    %c0_24 = arith.constant 0 : index
    %c0_25 = arith.constant 0 : index
    %66 = vector.load %arg2[%c0_24, %c0_25] : memref<32x288xf32, #tpu.memory_space<vmem>>, vector<32x288xf32>
    %c0_26 = arith.constant 0 : index
    %c0_27 = arith.constant 0 : index
    %67 = vector.load %arg11[%c0_26, %c0_27] : memref<288x256xf32, #tpu.memory_space<vmem>>, vector<288x256xf32>
    %cst_28 = arith.constant dense<0.000000e+00> : vector<32x256xf32>
    %68 = tpu.matmul %66, %67, %cst_28 {dimension_numbers = #tpu.dot_dimension_numbers<[1], [0], [0], [1], [0, 0, 1, 1], [], []>} : vector<32x288xf32>, vector<288x256xf32>, vector<32x256xf32> -> vector<32x256xf32>
    %c0_29 = arith.constant 0 : index
    %c0_30 = arith.constant 0 : index
    %69 = vector.load %arg3[%c0_29, %c0_30] : memref<32x1xf32, #tpu.memory_space<vmem>>, vector<32x1xf32>
    %70 = vector.broadcast %69 : vector<32x1xf32> to vector<32x256xf32>
    %71 = arith.addf %68, %70 : vector<32x256xf32>
    %cst_31 = arith.constant 0.000000e+00 : f32
    %72 = vector.broadcast %cst_31 : f32 to vector<32x256xf32>
    %73 = arith.maximumf %71, %72 : vector<32x256xf32>
    %c17_i32_32 = arith.constant 17 : i32
    %74 = tpu.dynamic_rotate %73 by %c17_i32_32 dim 1 : vector<32x256xf32>, i32 -> vector<32x256xf32>
    %cst_33 = arith.constant 0.000000e+00 : f32
    %75 = vector.shape_cast %11 : vector<1x256xi1> to vector<1x256xi1>
    %76 = vector.broadcast %75 : vector<1x256xi1> to vector<32x256xi1>
    %77 = vector.broadcast %cst_33 : f32 to vector<32x256xf32>
    %78 = arith.select %76, %74, %77 : vector<32x256xi1>, vector<32x256xf32>
    %c0_34 = arith.constant 0 : index
    %c0_35 = arith.constant 0 : index
    %79 = vector.load %arg11[%c0_34, %c0_35] : memref<288x256xf32, #tpu.memory_space<vmem>>, vector<32x256xf32>
    tpu.vector_store %arg11[%c0_34, %c0_35], %78 {strides = array<i32>} : memref<288x256xf32, #tpu.memory_space<vmem>>, vector<32x256xf32>,
    %c16_i32_36 = arith.constant 16 : i32
    %80 = tpu.dynamic_rotate %73 by %c16_i32_36 dim 1 : vector<32x256xf32>, i32 -> vector<32x256xf32>
    %cst_37 = arith.constant 0.000000e+00 : f32
    %81 = vector.shape_cast %4 : vector<1x256xi1> to vector<1x256xi1>
    %82 = vector.broadcast %81 : vector<1x256xi1> to vector<32x256xi1>
    %83 = vector.broadcast %cst_37 : f32 to vector<32x256xf32>
    %84 = arith.select %82, %80, %83 : vector<32x256xi1>, vector<32x256xf32>
    %c32_38 = arith.constant 32 : index
    %c0_39 = arith.constant 0 : index
    %85 = vector.load %arg11[%c32_38, %c0_39] : memref<288x256xf32, #tpu.memory_space<vmem>>, vector<32x256xf32>
    tpu.vector_store %arg11[%c32_38, %c0_39], %84 {strides = array<i32>} : memref<288x256xf32, #tpu.memory_space<vmem>>, vector<32x256xf32>,
    %c15_i32_40 = arith.constant 15 : i32
    %86 = tpu.dynamic_rotate %73 by %c15_i32_40 dim 1 : vector<32x256xf32>, i32 -> vector<32x256xf32>
    %cst_41 = arith.constant 0.000000e+00 : f32
    %87 = vector.shape_cast %12 : vector<1x256xi1> to vector<1x256xi1>
    %88 = vector.broadcast %87 : vector<1x256xi1> to vector<32x256xi1>
    %89 = vector.broadcast %cst_41 : f32 to vector<32x256xf32>
    %90 = arith.select %88, %86, %89 : vector<32x256xi1>, vector<32x256xf32>
    %c64_42 = arith.constant 64 : index
    %c0_43 = arith.constant 0 : index
    %91 = vector.load %arg11[%c64_42, %c0_43] : memref<288x256xf32, #tpu.memory_space<vmem>>, vector<32x256xf32>
    tpu.vector_store %arg11[%c64_42, %c0_43], %90 {strides = array<i32>} : memref<288x256xf32, #tpu.memory_space<vmem>>, vector<32x256xf32>,
    %c1_i32_44 = arith.constant 1 : i32
    %92 = tpu.dynamic_rotate %73 by %c1_i32_44 dim 1 : vector<32x256xf32>, i32 -> vector<32x256xf32>
    %cst_45 = arith.constant 0.000000e+00 : f32
    %93 = vector.shape_cast %8 : vector<1x256xi1> to vector<1x256xi1>
    %94 = vector.broadcast %93 : vector<1x256xi1> to vector<32x256xi1>
    %95 = vector.broadcast %cst_45 : f32 to vector<32x256xf32>
    %96 = arith.select %94, %92, %95 : vector<32x256xi1>, vector<32x256xf32>
    %c96_46 = arith.constant 96 : index
    %c0_47 = arith.constant 0 : index
    %97 = vector.load %arg11[%c96_46, %c0_47] : memref<288x256xf32, #tpu.memory_space<vmem>>, vector<32x256xf32>
    tpu.vector_store %arg11[%c96_46, %c0_47], %96 {strides = array<i32>} : memref<288x256xf32, #tpu.memory_space<vmem>>, vector<32x256xf32>,
    %c128_48 = arith.constant 128 : index
    %c0_49 = arith.constant 0 : index
    %98 = vector.load %arg11[%c128_48, %c0_49] : memref<288x256xf32, #tpu.memory_space<vmem>>, vector<32x256xf32>
    tpu.vector_store %arg11[%c128_48, %c0_49], %73 {strides = array<i32>} : memref<288x256xf32, #tpu.memory_space<vmem>>, vector<32x256xf32>,
    %c255_i32_50 = arith.constant 255 : i32
    %99 = tpu.dynamic_rotate %73 by %c255_i32_50 dim 1 : vector<32x256xf32>, i32 -> vector<32x256xf32>
    %cst_51 = arith.constant 0.000000e+00 : f32
    %100 = vector.shape_cast %10 : vector<1x256xi1> to vector<1x256xi1>
    %101 = vector.broadcast %100 : vector<1x256xi1> to vector<32x256xi1>
    %102 = vector.broadcast %cst_51 : f32 to vector<32x256xf32>
    %103 = arith.select %101, %99, %102 : vector<32x256xi1>, vector<32x256xf32>
    %c160_52 = arith.constant 160 : index
    %c0_53 = arith.constant 0 : index
    %104 = vector.load %arg11[%c160_52, %c0_53] : memref<288x256xf32, #tpu.memory_space<vmem>>, vector<32x256xf32>
    tpu.vector_store %arg11[%c160_52, %c0_53], %103 {strides = array<i32>} : memref<288x256xf32, #tpu.memory_space<vmem>>, vector<32x256xf32>,
    %c241_i32_54 = arith.constant 241 : i32
    %105 = tpu.dynamic_rotate %73 by %c241_i32_54 dim 1 : vector<32x256xf32>, i32 -> vector<32x256xf32>
    %cst_55 = arith.constant 0.000000e+00 : f32
    %106 = vector.shape_cast %13 : vector<1x256xi1> to vector<1x256xi1>
    %107 = vector.broadcast %106 : vector<1x256xi1> to vector<32x256xi1>
    %108 = vector.broadcast %cst_55 : f32 to vector<32x256xf32>
    %109 = arith.select %107, %105, %108 : vector<32x256xi1>, vector<32x256xf32>
    %c192_56 = arith.constant 192 : index
    %c0_57 = arith.constant 0 : index
    %110 = vector.load %arg11[%c192_56, %c0_57] : memref<288x256xf32, #tpu.memory_space<vmem>>, vector<32x256xf32>
    tpu.vector_store %arg11[%c192_56, %c0_57], %109 {strides = array<i32>} : memref<288x256xf32, #tpu.memory_space<vmem>>, vector<32x256xf32>,
    %c240_i32_58 = arith.constant 240 : i32
    %111 = tpu.dynamic_rotate %73 by %c240_i32_58 dim 1 : vector<32x256xf32>, i32 -> vector<32x256xf32>
    %cst_59 = arith.constant 0.000000e+00 : f32
    %112 = vector.shape_cast %6 : vector<1x256xi1> to vector<1x256xi1>
    %113 = vector.broadcast %112 : vector<1x256xi1> to vector<32x256xi1>
    %114 = vector.broadcast %cst_59 : f32 to vector<32x256xf32>
    %115 = arith.select %113, %111, %114 : vector<32x256xi1>, vector<32x256xf32>
    %c224_60 = arith.constant 224 : index
    %c0_61 = arith.constant 0 : index
    %116 = vector.load %arg11[%c224_60, %c0_61] : memref<288x256xf32, #tpu.memory_space<vmem>>, vector<32x256xf32>
    tpu.vector_store %arg11[%c224_60, %c0_61], %115 {strides = array<i32>} : memref<288x256xf32, #tpu.memory_space<vmem>>, vector<32x256xf32>,
    %c239_i32_62 = arith.constant 239 : i32
    %117 = tpu.dynamic_rotate %73 by %c239_i32_62 dim 1 : vector<32x256xf32>, i32 -> vector<32x256xf32>
    %cst_63 = arith.constant 0.000000e+00 : f32
    %118 = vector.shape_cast %14 : vector<1x256xi1> to vector<1x256xi1>
    %119 = vector.broadcast %118 : vector<1x256xi1> to vector<32x256xi1>
    %120 = vector.broadcast %cst_63 : f32 to vector<32x256xf32>
    %121 = arith.select %119, %117, %120 : vector<32x256xi1>, vector<32x256xf32>
    %c256_64 = arith.constant 256 : index
    %c0_65 = arith.constant 0 : index
    %122 = vector.load %arg11[%c256_64, %c0_65] : memref<288x256xf32, #tpu.memory_space<vmem>>, vector<32x256xf32>
    tpu.vector_store %arg11[%c256_64, %c0_65], %121 {strides = array<i32>} : memref<288x256xf32, #tpu.memory_space<vmem>>, vector<32x256xf32>,
    %c0_66 = arith.constant 0 : index
    %c0_67 = arith.constant 0 : index
    %123 = vector.load %arg4[%c0_66, %c0_67] : memref<32x288xf32, #tpu.memory_space<vmem>>, vector<32x288xf32>
    %c0_68 = arith.constant 0 : index
    %c0_69 = arith.constant 0 : index
    %124 = vector.load %arg11[%c0_68, %c0_69] : memref<288x256xf32, #tpu.memory_space<vmem>>, vector<288x256xf32>
    %cst_70 = arith.constant dense<0.000000e+00> : vector<32x256xf32>
    %125 = tpu.matmul %123, %124, %cst_70 {dimension_numbers = #tpu.dot_dimension_numbers<[1], [0], [0], [1], [0, 0, 1, 1], [], []>} : vector<32x288xf32>, vector<288x256xf32>, vector<32x256xf32> -> vector<32x256xf32>
    %c0_71 = arith.constant 0 : index
    %c0_72 = arith.constant 0 : index
    %126 = vector.load %arg5[%c0_71, %c0_72] : memref<32x1xf32, #tpu.memory_space<vmem>>, vector<32x1xf32>
    %127 = vector.broadcast %126 : vector<32x1xf32> to vector<32x256xf32>
    %128 = arith.addf %125, %127 : vector<32x256xf32>
    %cst_73 = arith.constant dense<0.000000e+00> : vector<32xf32>
    %129 = vector.multi_reduction <add>, %128, %cst_73 [1] : vector<32x256xf32> to vector<32xf32>
    %130 = vector.shape_cast %129 : vector<32xf32> to vector<32x1xf32>
    %cst_74 = arith.constant 3.906250e-03 : f32
    %131 = vector.broadcast %cst_74 : f32 to vector<32x1xf32>
    %132 = arith.mulf %130, %131 : vector<32x1xf32>
    %c0_75 = arith.constant 0 : index
    %c0_76 = arith.constant 0 : index
    %133 = vector.load %arg6[%c0_75, %c0_76] : memref<32x2xf32, #tpu.memory_space<vmem>>, vector<32x2xf32>
    %134 = vector.broadcast %132 : vector<32x1xf32> to vector<32x2xf32>
    %135 = arith.mulf %133, %134 : vector<32x2xf32>
    %cst_77 = arith.constant dense<0.000000e+00> : vector<2xf32>
    %136 = vector.multi_reduction <add>, %135, %cst_77 [0] : vector<32x2xf32> to vector<2xf32>
    %137 = vector.shape_cast %136 : vector<2xf32> to vector<1x2xf32>
    %c0_78 = arith.constant 0 : index
    %c0_79 = arith.constant 0 : index
    %138 = vector.load %arg7[%c0_78, %c0_79] : memref<1x2xf32, #tpu.memory_space<vmem>>, vector<1x2xf32>
    %139 = arith.addf %137, %138 : vector<1x2xf32>
    %cst_80 = arith.constant 0.000000e+00 : f32
    %140 = vector.broadcast %cst_80 : f32 to vector<1x2xf32>
    %141 = arith.maximumf %139, %140 : vector<1x2xf32>
    %c0_81 = arith.constant 0 : index
    %c0_82 = arith.constant 0 : index
    %142 = vector.load %arg8[%c0_81, %c0_82] : memref<32x2xf32, #tpu.memory_space<vmem>>, vector<32x2xf32>
    %143 = vector.broadcast %141 : vector<1x2xf32> to vector<32x2xf32>
    %144 = arith.mulf %142, %143 : vector<32x2xf32>
    %cst_83 = arith.constant dense<0.000000e+00> : vector<32xf32>
    %145 = vector.multi_reduction <add>, %144, %cst_83 [1] : vector<32x2xf32> to vector<32xf32>
    %146 = vector.shape_cast %145 : vector<32xf32> to vector<32x1xf32>
    %c0_84 = arith.constant 0 : index
    %c0_85 = arith.constant 0 : index
    %147 = vector.load %arg9[%c0_84, %c0_85] : memref<32x1xf32, #tpu.memory_space<vmem>>, vector<32x1xf32>
    %148 = arith.addf %146, %147 : vector<32x1xf32>
    %149 = arith.negf %148 : vector<32x1xf32>
    %150 = math.exp %149 : vector<32x1xf32>
    %cst_86 = arith.constant 1.000000e+00 : f32
    %151 = vector.broadcast %cst_86 : f32 to vector<32x1xf32>
    %152 = arith.addf %151, %150 : vector<32x1xf32>
    %153 = arith.divf %151, %152 : vector<32x1xf32>
    %154 = vector.broadcast %153 : vector<32x1xf32> to vector<32x256xf32>
    %155 = arith.mulf %128, %154 : vector<32x256xf32>
    %156 = arith.addf %155, %16 : vector<32x256xf32>
    %cst_87 = arith.constant 0.000000e+00 : f32
    %157 = vector.broadcast %cst_87 : f32 to vector<32x256xf32>
    %158 = arith.maximumf %156, %157 : vector<32x256xf32>
    %c0_88 = arith.constant 0 : index
    %c0_89 = arith.constant 0 : index
    %c0_90 = arith.constant 0 : index
    %159 = vector.load %arg10[%c0_88, %c0_89, %c0_90] : memref<1x32x256xf32, #tpu.memory_space<vmem>>, vector<1x32x256xf32>
    %160 = vector.shape_cast %159 : vector<1x32x256xf32> to vector<32x256xf32>
    %161 = vector.shape_cast %158 : vector<32x256xf32> to vector<1x32x256xf32>
    tpu.vector_store %arg10[%c0_88, %c0_89, %c0_90], %161 {strides = array<i32>} : memref<1x32x256xf32, #tpu.memory_space<vmem>>, vector<1x32x256xf32>,
    return
  }
  func.func @transform_0(%arg0: i32) -> (i32, i32, i32) {
    %c0_i32 = arith.constant 0 : i32
    %c0_i32_0 = arith.constant 0 : i32
    %c0_i32_1 = arith.constant 0 : i32
    return %arg0, %c0_i32, %c0_i32_0 : i32, i32, i32
  }
  func.func @transform_1(%arg0: i32) -> (i32, i32) {
    %c0_i32 = arith.constant 0 : i32
    %c0_i32_0 = arith.constant 0 : i32
    %c0_i32_1 = arith.constant 0 : i32
    return %c0_i32, %c0_i32_0 : i32, i32
  }
  func.func @transform_2(%arg0: i32) -> (i32, i32) {
    %c0_i32 = arith.constant 0 : i32
    %c0_i32_0 = arith.constant 0 : i32
    %c0_i32_1 = arith.constant 0 : i32
    return %c0_i32, %c0_i32_0 : i32, i32
  }
  func.func @transform_3(%arg0: i32) -> (i32, i32) {
    %c0_i32 = arith.constant 0 : i32
    %c0_i32_0 = arith.constant 0 : i32
    %c0_i32_1 = arith.constant 0 : i32
    return %c0_i32, %c0_i32_0 : i32, i32
  }
  func.func @transform_4(%arg0: i32) -> (i32, i32) {
    %c0_i32 = arith.constant 0 : i32
    %c0_i32_0 = arith.constant 0 : i32
    %c0_i32_1 = arith.constant 0 : i32
    return %c0_i32, %c0_i32_0 : i32, i32
  }
  func.func @transform_5(%arg0: i32) -> (i32, i32) {
    %c0_i32 = arith.constant 0 : i32
    %c0_i32_0 = arith.constant 0 : i32
    %c0_i32_1 = arith.constant 0 : i32
    return %c0_i32, %c0_i32_0 : i32, i32
  }
  func.func @transform_6(%arg0: i32) -> (i32, i32) {
    %c0_i32 = arith.constant 0 : i32
    %c0_i32_0 = arith.constant 0 : i32
    %c0_i32_1 = arith.constant 0 : i32
    return %c0_i32, %c0_i32_0 : i32, i32
  }
  func.func @transform_7(%arg0: i32) -> (i32, i32) {
    %c0_i32 = arith.constant 0 : i32
    %c0_i32_0 = arith.constant 0 : i32
    %c0_i32_1 = arith.constant 0 : i32
    return %c0_i32, %c0_i32_0 : i32, i32
  }
  func.func @transform_8(%arg0: i32) -> (i32, i32) {
    %c0_i32 = arith.constant 0 : i32
    %c0_i32_0 = arith.constant 0 : i32
    %c0_i32_1 = arith.constant 0 : i32
    return %c0_i32, %c0_i32_0 : i32, i32
  }
  func.func @transform_9(%arg0: i32) -> (i32, i32, i32) {
    %c0_i32 = arith.constant 0 : i32
    %c0_i32_0 = arith.constant 0 : i32
    %c0_i32_1 = arith.constant 0 : i32
    return %arg0, %c0_i32, %c0_i32_0 : i32, i32, i32
  }
}

</mosaic_0001>

<bundles_post_ra>
// kernel: basic_block_forward.1
= control target key start
LH: loop header
LB: loop body
LE: loop exit
PB: predicated region body
PF: predicated region fallthrough
CT: control target
= control target key end

     0   :  { %s2124_s30 = smov 0   ;;  %s3316_s0 = inlined_call_operand.vmem [shape: f32[2,32,256], index: 0, kind: input, shape index: {}]   ;;  %s3317_s1 = inlined_call_operand.vmem [shape: f32[32,288], index: 1, kind: input, shape index: {}]   ;;  %s3318_s2 = inlined_call_operand.vmem [shape: f32[32,1], index: 2, kind: input, shape index: {}]   ;;  %s3319_s3 = inlined_call_operand.vmem [shape: f32[32,288], index: 3, kind: input, shape index: {}]   ;;  %s3320_s4 = inlined_call_operand.vmem [shape: f32[32,1], index: 4, kind: input, shape index: {}]   ;;  %s3321_s5 = inlined_call_operand.vmem [shape: f32[32,2], index: 5, kind: input, shape index: {}]   ;;  %s3322_s6 = inlined_call_operand.vmem [shape: f32[1,2], index: 6, kind: input, shape index: {}]   ;;  %s3323_s7 = inlined_call_operand.vmem [shape: f32[32,2], index: 7, kind: input, shape index: {}]   ;;  %s3324_s8 = inlined_call_operand.vmem [shape: f32[32,1], index: 8, kind: input, shape index: {}]   ;;  %s3325_s9 = inlined_call_operand.vmem [shape: f32[2,32,256], index: 9, kind: output, shape index: {}]  }
   0x1 LB: > { %s1867_s10 = sadd.s32 4294967295, %s2062_s30   ;;  %p1871_p0 = scmp.ge.s32.totalorder %s2062_s30, 1  ;;  %s2062_s30 = sphi %s2124_s30, %s19_s30  }
   0x2   : > { %p287_p1 = scmp.lt.s32.totalorder %s2062_s30, 3 }
   0x4   : > { %p288_p2 = pnand %p1871_p0, %p287_p1 }
   0x5   : > { %p323_p3 = scmp.lt.s32.totalorder (!%p288_p2), %s1867_s10, 1  ;;  %s2064_s15 = smov (!%p288_p2), 1  }
   0x6   : > { %291 = sbr.rel (%p288_p2) target bundleno = 1384 (0x568), region = 56  ;;  %s2065_s16 = smov (!%p288_p2), 15  }
   0x7   : > { %s2066_s17 = smov (!%p288_p2), 16   ;;  %s2067_s18 = smov (!%p288_p2), 17  }
   0x8   : > { %s2068_s19 = smov (!%p288_p2), 112   ;;  %s2069_s20 = smov (!%p288_p2), 113  }
   0x9   : > { %s2070_s21 = smov (!%p288_p2), 127   ;;  %s2071_s24 = smov (!%p288_p2), 111  }
   0xb   : > { %s3370_s10 = smov (!%p323_p3, %s1867_s10), 1  ;;  %v333_v8 = vlaneseq  ;;  %v731_v10 = vld [vmem:[%s3317_s1 + $0x8] sm:$0xff]  ;;  %v2072_v16 = vmov 0.0   ;;  %v817_v34 = vld [vmem:[%s3318_s2 + $0x18] sm:$0xff]  ;;  %v2073_v35 = vmov 0   ;;  %v816_v36 = vld [vmem:[%s3318_s2 + $0x10] sm:$0xff] }
   0xc   : > { %s1890_s11 = sshll.u32 %s3370_s10, 6  ;;  %915 = vmatprep.mubr.f32.mxu0 %v731_v10  ;;  %1004 = vmatprep.mubr.f32.mxu1 %v2072_v16  ;;  %v814_v41 = vld [vmem:[%s3318_s2] sm:$0xff]  ;;  %v815_v44 = vld [vmem:[%s3318_s2 + $0x8] sm:$0xff] }
   0xd   : > { %s2140_s14 = scalar_lea.vmem %s3316_s0, %s1890_s11  ;;  %v2275_v9 = vand.u32 127, %v333_v8  ;;  %2030 = vset.pattern.permute.xlu0 %v2073_v35  ;;  %2031 = vset.pattern.permute.xlu1 %v2073_v35  ;;  %v1373_v29 = vld [vmem:[%s3319_s3 + $0x40] sm:$0xff]  ;;  %s3293_s29 = scalar_lea.vmem %s3325_s9, %s1890_s11 }
   0xe   : > { %v2143_v0 = vld [vmem:[%s2140_s14 + $0x30] sm:$0xff]  ;;  %v2146_v1 = vld [vmem:[%s2140_s14 + $0x20] sm:$0xff]  ;;  %v2153_v2 = vld [vmem:[%s2140_s14 + $0x38] sm:$0xff] }
   0xf   : > { %503 = vrot.lane.b32.xlu0 %v2143_v0, %s2064_s15  ;;  %501 = vrot.lane.b32.xlu1 %v2146_v1, %s2064_s15  ;;  %v2156_v3 = vld [vmem:[%s2140_s14 + $0x28] sm:$0xff]  ;;  %v2163_v4 = vld [vmem:[%s2140_s14 + $0x18] sm:$0xff]  ;;  %v2285_v11 = vadd.s32 128, %v2275_v9  ;;  %v336_v15 = vand.u32 15, %v2275_v9  ;;  %vm513_vm0 = vcmp.lt.s32.totalorder %v2275_v9, 1  ;;  %vm338_vm4 = vcmp.ge.s32.totalorder %v2275_v9, 16 }
  0x10   : > { %v2166_v5 = vld [vmem:[%s2140_s14 + $0x10] sm:$0xff]  ;;  %v2173_v6 = vld [vmem:[%s2140_s14 + $0x8] sm:$0xff]  ;;  %v2176_v7 = vld [vmem:[%s2140_s14] sm:$0xff]  ;;  %vm468_vm5 = vcmp.lt.s32.totalorder %v2275_v9, 15  ;;  %vm423_vm8 = vcmp.lt.s32.totalorder %v2275_v9, 16  ;;  %vm378_vm9 = vcmp.lt.s32.totalorder %v2275_v9, 17 }
  0x11   : > { %v337_v12 = vand.u32 15, %v2285_v11  ;;  %vm2303_vm2 = vcmp.ge.s32.totalorder %v336_v15, 1  ;;  %vm2339_vm3 = vcmp.lt.s32.totalorder %v336_v15, 15  ;;  %vm3327_vm11 = vcmp.lt.s32.totalorder %v2275_v9, 112 }
  0x12   : > { %vm2367_vm7 = vmand %vm338_vm4, %vm2339_vm3  ;;  %vm341_vm12 = vcmp.lt.s32.totalorder %v2285_v11, 240  ;;  %vm3326_vm13 = vcmp.lt.s32.totalorder %v2275_v9, 113  ;;  %vm3328_vm15 = vcmp.lt.s32.totalorder %v2275_v9, 127 }
  0x13   : > { %511 = vrot.lane.b32.xlu0 %v2153_v2, %s2064_s15  ;;  %509 = vrot.lane.b32.xlu1 %v2156_v3, %s2064_s15  ;;  %vm2299_vm1 = vcmp.ge.s32.totalorder %v337_v12, 1  ;;  %vm2359_vm6 = vcmp.lt.s32.totalorder %v337_v12, 15  ;;  %vm2439_vm10 = vmand %vm338_vm4, %vm2303_vm2 }
  0x14   : > { %vm2506_vm14 = vmand %vm341_vm12, %vm2299_vm1 }
  0x17   : > { %507 = vrot.lane.b32.xlu1 %v2163_v4, %s2064_s15  ;;  %499 = vrot.lane.b32.xlu0 %v2166_v5, %s2064_s15 }
  0x1b   : > { %505 = vrot.lane.b32.xlu1 %v2173_v6, %s2064_s15  ;;  %497 = vrot.lane.b32.xlu0 %v2176_v7, %s2064_s15 }
  0x1f   : > { %466 = vrot.lane.b32.xlu1 %v2153_v2, %s2065_s16  ;;  %458 = vrot.lane.b32.xlu0 %v2143_v0, %s2065_s16 }
  0x23   : > { %464 = vrot.lane.b32.xlu1 %v2156_v3, %s2065_s16  ;;  %456 = vrot.lane.b32.xlu0 %v2146_v1, %s2065_s16 }
  0x27   : > { %462 = vrot.lane.b32.xlu1 %v2163_v4, %s2065_s16  ;;  %454 = vrot.lane.b32.xlu0 %v2166_v5, %s2065_s16 }
  0x2b   : > { %460 = vrot.lane.b32.xlu1 %v2173_v6, %s2065_s16  ;;  %452 = vrot.lane.b32.xlu0 %v2176_v7, %s2065_s16 }
  0x2f   : > { %421 = vrot.lane.b32.xlu1 %v2153_v2, %s2066_s17  ;;  %413 = vrot.lane.b32.xlu0 %v2143_v0, %s2066_s17 }
  0x33   : > { %419 = vrot.lane.b32.xlu1 %v2156_v3, %s2066_s17  ;;  %411 = vrot.lane.b32.xlu0 %v2146_v1, %s2066_s17 }
  0x37   : > { %417 = vrot.lane.b32.xlu1 %v2163_v4, %s2066_s17  ;;  %409 = vrot.lane.b32.xlu0 %v2166_v5, %s2066_s17 }
  0x3b   : > { %415 = vrot.lane.b32.xlu1 %v2173_v6, %s2066_s17  ;;  %407 = vrot.lane.b32.xlu0 %v2176_v7, %s2066_s17 }
  0x3f   : > { %376 = vrot.lane.b32.xlu1 %v2153_v2, %s2067_s18  ;;  %368 = vrot.lane.b32.xlu0 %v2143_v0, %s2067_s18 }
  0x43   : > { %374 = vrot.lane.b32.xlu1 %v2156_v3, %s2067_s18  ;;  %366 = vrot.lane.b32.xlu0 %v2146_v1, %s2067_s18 }
  0x47   : > { %372 = vrot.lane.b32.xlu1 %v2163_v4, %s2067_s18  ;;  %364 = vrot.lane.b32.xlu0 %v2166_v5, %s2067_s18 }
  0x4b   : > { %370 = vrot.lane.b32.xlu1 %v2173_v6, %s2067_s18  ;;  %362 = vrot.lane.b32.xlu0 %v2176_v7, %s2067_s18 }
  0x4f   : > { %654 = vrot.lane.b32.xlu1 %v2153_v2, %s2068_s19  ;;  %646 = vrot.lane.b32.xlu0 %v2143_v0, %s2068_s19 }
  0x53   : > { %652 = vrot.lane.b32.xlu1 %v2156_v3, %s2068_s19  ;;  %644 = vrot.lane.b32.xlu0 %v2146_v1, %s2068_s19 }
  0x57   : > { %650 = vrot.lane.b32.xlu1 %v2163_v4, %s2068_s19  ;;  %642 = vrot.lane.b32.xlu0 %v2166_v5, %s2068_s19 }
  0x5b   : > { %648 = vrot.lane.b32.xlu1 %v2173_v6, %s2068_s19  ;;  %640 = vrot.lane.b32.xlu0 %v2176_v7, %s2068_s19 }
  0x5f   : > { %609 = vrot.lane.b32.xlu1 %v2153_v2, %s2069_s20  ;;  %601 = vrot.lane.b32.xlu0 %v2143_v0, %s2069_s20 }
  0x63   : > { %607 = vrot.lane.b32.xlu1 %v2156_v3, %s2069_s20  ;;  %599 = vrot.lane.b32.xlu0 %v2146_v1, %s2069_s20 }
  0x67   : > { %605 = vrot.lane.b32.xlu1 %v2163_v4, %s2069_s20  ;;  %597 = vrot.lane.b32.xlu0 %v2166_v5, %s2069_s20 }
  0x6b   : > { %603 = vrot.lane.b32.xlu1 %v2173_v6, %s2069_s20  ;;  %595 = vrot.lane.b32.xlu0 %v2176_v7, %s2069_s20 }
  0x6f   : > { %564 = vrot.lane.b32.xlu1 %v2153_v2, %s2070_s21  ;;  %556 = vrot.lane.b32.xlu0 %v2143_v0, %s2070_s21 }
  0x73   : > { %562 = vrot.lane.b32.xlu1 %v2156_v3, %s2070_s21  ;;  %554 = vrot.lane.b32.xlu0 %v2146_v1, %s2070_s21 }
  0x77   : > { %560 = vrot.lane.b32.xlu1 %v2163_v4, %s2070_s21  ;;  %552 = vrot.lane.b32.xlu0 %v2166_v5, %s2070_s21 }
  0x7b   : > { %558 = vrot.lane.b32.xlu1 %v2173_v6, %s2070_s21  ;;  %550 = vrot.lane.b32.xlu0 %v2176_v7, %s2070_s21 }
  0x7f   : > { %699 = vrot.lane.b32.xlu1 %v2153_v2, %s2071_s24  ;;  %691 = vrot.lane.b32.xlu0 %v2143_v0, %s2071_s24 }
  0x81   : > { %v504_v13 = vpop.permute.xlu0 %503  ;;  %v502_v14 = vpop.permute.xlu1 %501 }
  0x83   : > { %697 = vrot.lane.b32.xlu1 %v2156_v3, %s2071_s24  ;;  %689 = vrot.lane.b32.xlu0 %v2146_v1, %s2071_s24 }
  0x85   : > { %v512_v18 = vpop.permute.xlu0 %511  ;;  %v510_v19 = vpop.permute.xlu1 %509 }
  0x86   : > { %v517_v21 = vsel %vm513_vm0, %v504_v13, %v512_v18  ;;  %v521_v22 = vsel %vm513_vm0, %v512_v18, %v504_v13  ;;  %v516_v23 = vsel %vm513_vm0, %v502_v14, %v510_v19  ;;  %v520_v26 = vsel %vm513_vm0, %v510_v19, %v502_v14 }
  0x87   : > { %1892 = vmatprep.subr.msk.mxu0 %vm2299_vm1, %v517_v21  ;;  %695 = vrot.lane.b32.xlu1 %v2163_v4, %s2071_s24 }
  0x88   : > { %687 = vrot.lane.b32.xlu0 %v2166_v5, %s2071_s24  ;;  %1893 = vmatpush1.msk.msra.mxu0 %vm2303_vm2, %v521_v22 }
  0x89   : > { %1894 = vmatprep.subr.msk.mxu0 %vm2299_vm1, %v516_v23  ;;  %v508_v24 = vpop.permute.xlu1 %507  ;;  %v500_v25 = vpop.permute.xlu0 %499 }
  0x8a   : > { %1895 = vmatpush1.msk.msra.mxu0 %vm2303_vm2, %v520_v26  ;;  %v515_v27 = vsel %vm513_vm0, %v500_v25, %v508_v24  ;;  %v519_v28 = vsel %vm513_vm0, %v508_v24, %v500_v25 }
  0x8b   : > { %1896 = vmatprep.subr.msk.mxu0 %vm2299_vm1, %v515_v27  ;;  %693 = vrot.lane.b32.xlu1 %v2173_v6, %s2071_s24 }
  0x8c   : > { %685 = vrot.lane.b32.xlu0 %v2176_v7, %s2071_s24  ;;  %1897 = vmatpush1.msk.msra.mxu0 %vm2303_vm2, %v519_v28 }
  0x8d   : > { %v506_v30 = vpop.permute.xlu1 %505  ;;  %v498_v31 = vpop.permute.xlu0 %497 }
  0x8e   : > { %v514_v32 = vsel %vm513_vm0, %v498_v31, %v506_v30  ;;  %v518_v33 = vsel %vm513_vm0, %v506_v30, %v498_v31 }
  0x8f   : > { %1898 = vmatprep.subr.msk.mxu0 %vm2299_vm1, %v514_v32  ;;  %830 = vperm.xlu1 %2031, %v816_v36  }
  0x90   : > { %1899 = vmatpush1.msk.msra.mxu0 %vm2303_vm2, %v518_v33  ;;  %835 = vperm.xlu0 %2030, %v817_v34  }
  0x91   : > { %v467_v38 = vpop.permute.xlu1 %466  ;;  %v459_v39 = vpop.permute.xlu0 %458 }
  0x92   : > { %v472_v42 = vsel %vm468_vm5, %v459_v39, %v467_v38  ;;  %v476_v43 = vsel %vm468_vm5, %v467_v38, %v459_v39 }
  0x93   : > { %1900 = vmatprep.subr.msk.mxu0 %vm2359_vm6, %v472_v42  ;;  %825 = vperm.xlu1 %2031, %v815_v44  }
  0x94   : > { %1901 = vmatpush1.msk.msra.mxu0 %vm2367_vm7, %v476_v43  ;;  %820 = vperm.xlu0 %2030, %v814_v41  }
  0x95   : > { %v465_v45 = vpop.permute.xlu1 %464  ;;  %v457_v46 = vpop.permute.xlu0 %456 }
  0x96   : > { %v471_v47 = vsel %vm468_vm5, %v457_v46, %v465_v45  ;;  %v475_v48 = vsel %vm468_vm5, %v465_v45, %v457_v46 }
  0x97   : > { %1902 = vmatprep.subr.msk.mxu0 %vm2359_vm6, %v471_v47 }
  0x98   : > { %1903 = vmatpush1.msk.msra.mxu0 %vm2367_vm7, %v475_v48 }
  0x99   : > { %v463_v49 = vpop.permute.xlu1 %462  ;;  %v455_v50 = vpop.permute.xlu0 %454 }
  0x9a   : > { %v470_v51 = vsel %vm468_vm5, %v455_v50, %v463_v49  ;;  %v474_v52 = vsel %vm468_vm5, %v463_v49, %v455_v50 }
  0x9b   : > { %1904 = vmatprep.subr.msk.mxu0 %vm2359_vm6, %v470_v51 }
  0x9c   : > { %1905 = vmatpush1.msk.msra.mxu0 %vm2367_vm7, %v474_v52 }
  0x9d   : > { %v461_v53 = vpop.permute.xlu1 %460  ;;  %v453_v54 = vpop.permute.xlu0 %452 }
  0x9e   : > { %v469_v55 = vsel %vm468_vm5, %v453_v54, %v461_v53  ;;  %v473_v56 = vsel %vm468_vm5, %v461_v53, %v453_v54 }
  0x9f   : > { %1906 = vmatprep.subr.msk.mxu0 %vm2359_vm6, %v469_v55 }
  0xa0   : > { %1907 = vmatpush1.msk.msra.mxu0 %vm2367_vm7, %v473_v56 }
  0xa1   : > { %v422_v57 = vpop.permute.xlu1 %421  ;;  %v414_v58 = vpop.permute.xlu0 %413 }
  0xa2   : > { %v427_v59 = vsel %vm423_vm8, %v414_v58, %v422_v57  ;;  %v431_v60 = vsel %vm423_vm8, %v422_v57, %v414_v58 }
  0xa3   : > { %867 = vmatprep.subr.mxu0 %v427_v59 }
  0xa4   : > { %1908 = vmatpush1.msk.msra.mxu0 %vm338_vm4, %v431_v60 }
  0xa5   : > { %v420_v61 = vpop.permute.xlu1 %419  ;;  %v412_v62 = vpop.permute.xlu0 %411 }
  0xa6   : > { %v426_v63 = vsel %vm423_vm8, %v412_v62, %v420_v61  ;;  %v430_v10 = vsel %vm423_vm8, %v420_v61, %v412_v62 }
  0xa7   : > { %869 = vmatprep.subr.mxu0 %v426_v63 }
  0xa8   : > { %1909 = vmatpush1.msk.msra.mxu0 %vm338_vm4, %v430_v10 }
  0xa9   : > { %v418_v12 = vpop.permute.xlu1 %417  ;;  %v410_v13 = vpop.permute.xlu0 %409 }
  0xaa   : > { %v425_v14 = vsel %vm423_vm8, %v410_v13, %v418_v12  ;;  %v429_v15 = vsel %vm423_vm8, %v418_v12, %v410_v13 }
  0xab   : > { %871 = vmatprep.subr.mxu0 %v425_v14 }
  0xac   : > { %1910 = vmatpush1.msk.msra.mxu0 %vm338_vm4, %v429_v15 }
  0xad   : > { %v416_v18 = vpop.permute.xlu1 %415  ;;  %v408_v19 = vpop.permute.xlu0 %407 }
  0xae   : > { %v424_v21 = vsel %vm423_vm8, %v408_v19, %v416_v18  ;;  %v428_v22 = vsel %vm423_vm8, %v416_v18, %v408_v19 }
  0xaf   : > { %873 = vmatprep.subr.mxu0 %v424_v21 }
  0xb0   : > { %1911 = vmatpush1.msk.msra.mxu0 %vm338_vm4, %v428_v22 }
  0xb1   : > { %v377_v23 = vpop.permute.xlu1 %376  ;;  %v369_v24 = vpop.permute.xlu0 %368 }
  0xb2   : > { %v382_v26 = vsel %vm378_vm9, %v369_v24, %v377_v23  ;;  %v386_v27 = vsel %vm378_vm9, %v377_v23, %v369_v24 }
  0xb3   : > { %1912 = vmatprep.subr.msk.mxu0 %vm2299_vm1, %v382_v26 }
  0xb4   : > { %1913 = vmatpush1.msk.msra.mxu0 %vm2439_vm10, %v386_v27 }
  0xb5   : > { %v375_v28 = vpop.permute.xlu1 %374  ;;  %v367_v30 = vpop.permute.xlu0 %366 }
  0xb6   : > { %v381_v31 = vsel %vm378_vm9, %v367_v30, %v375_v28  ;;  %v385_v32 = vsel %vm378_vm9, %v375_v28, %v367_v30 }
  0xb7   : > { %1914 = vmatprep.subr.msk.mxu0 %vm2299_vm1, %v381_v31 }
  0xb8   : > { %1915 = vmatpush1.msk.msra.mxu0 %vm2439_vm10, %v385_v32 }
  0xb9   : > { %v373_v33 = vpop.permute.xlu1 %372  ;;  %v365_v34 = vpop.permute.xlu0 %364 }
  0xba   : > { %v380_v35 = vsel %vm378_vm9, %v365_v34, %v373_v33  ;;  %v384_v36 = vsel %vm378_vm9, %v373_v33, %v365_v34 }
  0xbb   : > { %1916 = vmatprep.subr.msk.mxu0 %vm2299_vm1, %v380_v35 }
  0xbc   : > { %1917 = vmatpush1.msk.msra.mxu0 %vm2439_vm10, %v384_v36 }
  0xbd   : > { %v371_v38 = vpop.permute.xlu1 %370  ;;  %v363_v39 = vpop.permute.xlu0 %362 }
  0xbe   : > { %v379_v41 = vsel %vm378_vm9, %v363_v39, %v371_v38  ;;  %v383_v42 = vsel %vm378_vm9, %v371_v38, %v363_v39 }
  0xbf   : > { %1918 = vmatprep.subr.msk.mxu0 %vm2299_vm1, %v379_v41 }
  0xc0   : > { %1919 = vmatpush1.msk.msra.mxu0 %vm2439_vm10, %v383_v42 }
  0xc1   : > { %v655_v43 = vpop.permute.xlu1 %654  ;;  %v647_v44 = vpop.permute.xlu0 %646 }
  0xc2   : > { %v664_v45 = vsel %vm3327_vm11, %v655_v43, %v647_v44  ;;  %v660_v46 = vsel %vm3327_vm11, %v647_v44, %v655_v43 }
  0xc3   : > { %1920 = vmatprep.subr.msk.mxu0 %vm341_vm12, %v664_v45 }
  0xc4   : > { %884 = vmatpush2.msra.mxu0 %v660_v46  ;;  %v1370_v46 = vld [vmem:[%s3319_s3 + $0x28] sm:$0xff] }
  0xc5   : > { %v653_v47 = vpop.permute.xlu1 %652  ;;  %v645_v48 = vpop.permute.xlu0 %644 }
  0xc6   : > { %v663_v49 = vsel %vm3327_vm11, %v653_v47, %v645_v48  ;;  %v659_v50 = vsel %vm3327_vm11, %v645_v48, %v653_v47 }
  0xc7   : > { %1921 = vmatprep.subr.msk.mxu0 %vm341_vm12, %v663_v49 }
  0xc8   : > { %886 = vmatpush2.msra.mxu0 %v659_v50 }
  0xc9   : > { %v651_v51 = vpop.permute.xlu1 %650  ;;  %v643_v52 = vpop.permute.xlu0 %642 }
  0xca   : > { %v662_v53 = vsel %vm3327_vm11, %v651_v51, %v643_v52  ;;  %v658_v54 = vsel %vm3327_vm11, %v643_v52, %v651_v51 }
  0xcb   : > { %1922 = vmatprep.subr.msk.mxu0 %vm341_vm12, %v662_v53 }
  0xcc   : > { %888 = vmatpush2.msra.mxu0 %v658_v54 }
  0xcd   : > { %v649_v55 = vpop.permute.xlu1 %648  ;;  %v641_v56 = vpop.permute.xlu0 %640 }
  0xce   : > { %v661_v57 = vsel %vm3327_vm11, %v649_v55, %v641_v56  ;;  %v657_v58 = vsel %vm3327_vm11, %v641_v56, %v649_v55  ;;  %vm2580_vm11 = vmand %vm341_vm12, %vm2359_vm6 }
  0xcf   : > { %1923 = vmatprep.subr.msk.mxu0 %vm341_vm12, %v661_v57  ;;  %v736_v57 = vld [vmem:[%s3317_s1 + $0x30] sm:$0xff] }
  0xd0   : > { %890 = vmatpush2.msra.mxu0 %v657_v58 }
  0xd1   : > { %v610_v60 = vpop.permute.xlu1 %609  ;;  %v602_v61 = vpop.permute.xlu0 %601 }
  0xd2   : > { %v619_v62 = vsel %vm3326_vm13, %v610_v60, %v602_v61  ;;  %v615_v63 = vsel %vm3326_vm13, %v602_v61, %v610_v60  ;;  %v732_v61 = vld [vmem:[%s3317_s1 + $0x10] sm:$0xff] }
  0xd3   : > { %1924 = vmatprep.subr.msk.mxu0 %vm2506_vm14, %v619_v62  ;;  %v740_v62 = vld [vmem:[%s3317_s1 + $0x50] sm:$0xff] }
  0xd4   : > { %1925 = vmatpush2.msk.msra.mxu0 %vm2303_vm2, %v615_v63  ;;  %v739_v63 = vld [vmem:[%s3317_s1 + $0x48] sm:$0xff] }
  0xd5   : > { %v608_v10 = vpop.permute.xlu1 %607  ;;  %v600_v12 = vpop.permute.xlu0 %599 }
  0xd6   : > { %v618_v13 = vsel %vm3326_vm13, %v608_v10, %v600_v12  ;;  %v614_v14 = vsel %vm3326_vm13, %v600_v12, %v608_v10  ;;  %v735_v10 = vld [vmem:[%s3317_s1 + $0x28] sm:$0xff]  ;;  %v738_v12 = vld [vmem:[%s3317_s1 + $0x40] sm:$0xff] }
  0xd7   : > { %1926 = vmatprep.subr.msk.mxu0 %vm2506_vm14, %v618_v13  ;;  %v741_v13 = vld [vmem:[%s3317_s1 + $0x58] sm:$0xff] }
  0xd8   : > { %1927 = vmatpush2.msk.msra.mxu0 %vm2303_vm2, %v614_v14 }
  0xd9   : > { %v606_v15 = vpop.permute.xlu1 %605  ;;  %v598_v18 = vpop.permute.xlu0 %597 }
  0xda   : > { %v617_v19 = vsel %vm3326_vm13, %v606_v15, %v598_v18  ;;  %v613_v21 = vsel %vm3326_vm13, %v598_v18, %v606_v15 }
  0xdb   : > { %1928 = vmatprep.subr.msk.mxu0 %vm2506_vm14, %v617_v19 }
  0xdc   : > { %1929 = vmatpush2.msk.msra.mxu0 %vm2303_vm2, %v613_v21 }
  0xdd   : > { %v604_v22 = vpop.permute.xlu1 %603  ;;  %v596_v23 = vpop.permute.xlu0 %595 }
  0xde   : > { %v616_v24 = vsel %vm3326_vm13, %v604_v22, %v596_v23  ;;  %v612_v26 = vsel %vm3326_vm13, %v596_v23, %v604_v22  ;;  %vm701_vm13 = vcmp.lt.s32.totalorder %v2275_v9, 111 }
  0xdf   : > { %1930 = vmatprep.subr.msk.mxu0 %vm2506_vm14, %v616_v24 }
  0xe0   : > { %1931 = vmatpush2.msk.msra.mxu0 %vm2303_vm2, %v612_v26 }
  0xe1   : > { %v565_v27 = vpop.permute.xlu1 %564  ;;  %v557_v28 = vpop.permute.xlu0 %556 }
  0xe2   : > { %v574_v30 = vsel %vm3328_vm15, %v565_v27, %v557_v28  ;;  %v570_v31 = vsel %vm3328_vm15, %v557_v28, %v565_v27 }
  0xe3   : > { %1932 = vmatprep.subr.msk.mxu0 %vm2359_vm6, %v574_v30 }
  0xe4   : > { %1933 = vmatpush2.msk.msra.mxu0 %vm2339_vm3, %v570_v31 }
  0xe5   : > { %v563_v32 = vpop.permute.xlu1 %562  ;;  %v555_v33 = vpop.permute.xlu0 %554 }
  0xe6   : > { %v569_v34 = vsel %vm3328_vm15, %v555_v33, %v563_v32  ;;  %v573_v35 = vsel %vm3328_vm15, %v563_v32, %v555_v33 }
  0xe7   : > { %1934 = vmatprep.subr.msk.mxu0 %vm2359_vm6, %v573_v35 }
  0xe8   : > { %1935 = vmatpush2.msk.msra.mxu0 %vm2339_vm3, %v569_v34 }
  0xe9   : > { %v561_v36 = vpop.permute.xlu1 %560  ;;  %v553_v38 = vpop.permute.xlu0 %552 }
  0xea   : > { %v568_v39 = vsel %vm3328_vm15, %v553_v38, %v561_v36  ;;  %v572_v41 = vsel %vm3328_vm15, %v561_v36, %v553_v38 }
  0xeb   : > { %1936 = vmatprep.subr.msk.mxu0 %vm2359_vm6, %v572_v41 }
  0xec   : > { %1937 = vmatpush2.msk.msra.mxu0 %vm2339_vm3, %v568_v39 }
  0xed   : > { %v559_v42 = vpop.permute.xlu1 %558  ;;  %v551_v43 = vpop.permute.xlu0 %550 }
  0xee   : > { %v567_v44 = vsel %vm3328_vm15, %v551_v43, %v559_v42  ;;  %v571_v45 = vsel %vm3328_vm15, %v559_v42, %v551_v43  ;;  %vm838_vm15 = vcmask 261120  }
  0xef   : > { %1938 = vmatprep.subr.msk.mxu0 %vm2359_vm6, %v571_v45 }
  0xf0   : > { %1939 = vmatpush2.msk.msra.mxu0 %vm2339_vm3, %v567_v44 }
  0xf1   : > { %v700_v47 = vpop.permute.xlu1 %699  ;;  %907 = vmatprep.subr.mxu0 %v2153_v2  ;;  %v692_v48 = vpop.permute.xlu0 %691 }
  0xf2   : > { %908 = vmatpush2.msra.mxu0 %v2143_v0  ;;  %v709_v49 = vsel %vm701_vm13, %v700_v47, %v692_v48  ;;  %v705_v50 = vsel %vm701_vm13, %v692_v48, %v700_v47 }
  0xf3   : > { %909 = vmatprep.subr.mxu0 %v2156_v3  ;;  %1940 = vmatprep.subr.msk.mxu1 %vm2580_vm11, %v709_v49  ;;  %v730_v3 = vld [vmem:[%s3317_s1] sm:$0xff] }
  0xf4   : > { %910 = vmatpush2.msra.mxu0 %v2146_v1  ;;  %1941 = vmatpush1.msk.msra.mxu1 %vm2339_vm3, %v705_v50  ;;  %v734_v1 = vld [vmem:[%s3317_s1 + $0x20] sm:$0xff] }
  0xf5   : > { %v698_v2 = vpop.permute.xlu1 %697  ;;  %911 = vmatprep.subr.mxu0 %v2163_v4  ;;  %v690_v0 = vpop.permute.xlu0 %689 }
  0xf6   : > { %v704_v51 = vsel %vm701_vm13, %v690_v0, %v698_v2  ;;  %v708_v52 = vsel %vm701_vm13, %v698_v2, %v690_v0  ;;  %912 = vmatpush2.msra.mxu0 %v2166_v5 }
  0xf7   : > { %913 = vmatprep.subr.mxu0 %v2173_v6  ;;  %1942 = vmatprep.subr.msk.mxu1 %vm2580_vm11, %v708_v52  ;;  %v733_v6 = vld [vmem:[%s3317_s1 + $0x18] sm:$0xff] }
  0xf8   : > { %914 = vmatpush2.msra.mxu0 %v2176_v7  ;;  %1943 = vmatpush1.msk.msra.mxu1 %vm2339_vm3, %v704_v51  ;;  %v737_v7 = vld [vmem:[%s3317_s1 + $0x38] sm:$0xff] }
  0xf9   : > { %v696_v4 = vpop.permute.xlu1 %695  ;;  %916 = vmatmul.mubr.f32.vlgmr.msra.gmra.mxu0 %v730_v3 }
  0xfa   : > { %v688_v5 = vpop.permute.xlu0 %687  ;;  %921 = vmatprep.mubr.f32.mxu0 %v734_v1 }
  0xfb   : > { %v703_v53 = vsel %vm701_vm13, %v688_v5, %v696_v4  ;;  %v707_v54 = vsel %vm701_vm13, %v696_v4, %v688_v5 }
  0xfc   : > { %1944 = vmatprep.subr.msk.mxu1 %vm2580_vm11, %v707_v54 }
  0xfd   : > { %1945 = vmatpush1.msk.msra.mxu1 %vm2339_vm3, %v703_v53  ;;  %v694_v55 = vpop.permute.xlu1 %693  ;;  %922 = vmatmul.mubr.f32.gmra.mxu0 %v733_v6 }
  0xfe   : > { %v686_v56 = vpop.permute.xlu0 %685  ;;  %927 = vmatprep.mubr.f32.mxu0 %v737_v7 }
  0xff   : > { %v702_v58 = vsel %vm701_vm13, %v686_v56, %v694_v55  ;;  %v706_v60 = vsel %vm701_vm13, %v694_v55, %v686_v56 }
 0x100   : > { %1946 = vmatprep.subr.msk.mxu1 %vm2580_vm11, %v706_v60 }
 0x101   : > { %1947 = vmatpush1.msk.msra.mxu1 %vm2339_vm3, %v702_v58  ;;  %928 = vmatmul.mubr.f32.gmra.mxu0 %v736_v57  ;;  %v1366_v58 = vld [vmem:[%s3319_s3 + $0x8] sm:$0xff] }
 0x102   : > { %1876 = vmatmul.mubr.msk.f32.vlgmr.msra.gmra.mxu1 %vm838_vm15, %v732_v61  ;;  %933 = vmatprep.mubr.f32.mxu0 %v740_v62 }
 0x103   : > { %1010 = vmatprep.mubr.f32.mxu1 %v2072_v16 }
 0x105   : > { %934 = vmatmul.mubr.f32.gmra.mxu0 %v739_v63 }
 0x106   : > { %1877 = vmatmul.mubr.msk.f32.gmra.mxu1 %vm838_vm15, %v735_v10  ;;  %1638 = vmatprep.mubr.f32.mxu0 %v2072_v16 }
 0x107   : > { %1016 = vmatprep.mubr.f32.mxu1 %v2072_v16 }
 0x10a   : > { %1878 = vmatmul.mubr.msk.f32.gmra.mxu1 %vm838_vm15, %v738_v12  ;;  %v831_v27 = vpop.permute.xlu1 %830 }
 0x10b   : > { %1022 = vmatprep.mubr.f32.mxu1 %v2072_v16  ;;  %v2665_v14 = vpop.permute.xlu0 %835 }
 0x10e   : > { %1879 = vmatmul.mubr.msk.f32.gmra.mxu1 %vm838_vm15, %v741_v13  ;;  %v826_v33 = vpop.permute.xlu1 %825 }
 0x10f   : > { %v821_v18 = vpop.permute.xlu0 %820  ;;  %1549 = vmatprep.mubr.f32.mxu1 %v1366_v58 }
 0x1b9   : > { %v917_v15 = vpop.f32.mrf.mxu0 }
 0x1ba   : > { %v918_v19 = vadd.f32 %v917_v15, %v821_v18 }
 0x1bb   : > { %v919_v21 = vpop.f32.mrf.mxu0 }
 0x1bc   : > { %v920_v23 = vadd.f32 %v919_v21, %v821_v18  ;;  %v1449_v18 = vld [vmem:[%s3320_s4] sm:$0xff] }
 0x1bd   : > { %v923_v32 = vpop.f32.mrf.mxu0 }
 0x1be   : > { %v924_v34 = vadd.f32 %v923_v32, %v826_v33  ;;  %v1452_v32 = vld [vmem:[%s3320_s4 + $0x18] sm:$0xff] }
 0x1bf   : > { %v925_v35 = vpop.f32.mrf.mxu0 }
 0x1c0   : > { %v926_v38 = vadd.f32 %v925_v35, %v826_v33 }
 0x1c1   : > { %v929_v45 = vpop.f32.mrf.mxu0 }
 0x1c2   : > { %v1006_v22 = vpop.f32.mrf.mxu1  ;;  %v930_v47 = vadd.f32 %v929_v45, %v831_v27 }
 0x1c3   : > { %v1007_v24 = vadd.f32 %v1006_v22, %v918_v19  ;;  %v931_v48 = vpop.f32.mrf.mxu0  ;;  %v1450_v22 = vld [vmem:[%s3320_s4 + $0x8] sm:$0xff] }
 0x1c4   : > { %v1008_v26 = vpop.f32.mrf.mxu1  ;;  %v932_v50 = vadd.f32 %v931_v48, %v831_v27  ;;  %v1451_v27 = vld [vmem:[%s3320_s4 + $0x10] sm:$0xff] }
 0x1c5   : > { %v2667_v28 = vmax.f32 %v1007_v24, 0.0  ;;  %v1009_v30 = vadd.f32 %v1008_v26, %v920_v23  ;;  %v935_v1 = vpop.f32.mrf.mxu0 }
 0x1c6   : > { %v1012_v36 = vpop.f32.mrf.mxu1  ;;  %v936_v6 = vadd.f32 %v935_v1, %v2665_v14 }
 0x1c7   : > { %v2669_v31 = vmax.f32 %v1009_v30, 0.0  ;;  %1157 = vrot.lane.b32.xlu1 %v2667_v28, %s2064_s15  ;;  %v1013_v39 = vadd.f32 %v1012_v36, %v924_v34  ;;  %v937_v5 = vpop.f32.mrf.mxu0 }
 0x1c8   : > { %v1014_v41 = vpop.f32.mrf.mxu1  ;;  %v938_v54 = vadd.f32 %v937_v5, %v2665_v14 }
 0x1c9   : > { %1165 = vrot.lane.b32.xlu0 %v2669_v31, %s2064_s15  ;;  %v1015_v42 = vadd.f32 %v1014_v41, %v926_v38  ;;  %v2685_v43 = vmax.f32 %v1013_v39, 0.0 }
 0x1ca   : > { %v1018_v49 = vpop.f32.mrf.mxu1 }
 0x1cb   : > { %1117 = vrot.lane.b32.xlu1 %v2667_v28, %s2065_s16  ;;  %v2689_v44 = vmax.f32 %v1015_v42, 0.0  ;;  %v1019_v2 = vadd.f32 %v1018_v49, %v930_v47 }
 0x1cc   : > { %v1020_v0 = vpop.f32.mrf.mxu1 }
 0x1cd   : > { %1125 = vrot.lane.b32.xlu0 %v2669_v31, %s2065_s16  ;;  %v1021_v51 = vadd.f32 %v1020_v0, %v932_v50  ;;  %v2709_v52 = vmax.f32 %v1019_v2, 0.0 }
 0x1ce   : > { %v1024_v4 = vpop.f32.mrf.mxu1 }
 0x1cf   : > { %1077 = vrot.lane.b32.xlu1 %v2667_v28, %s2066_s17  ;;  %v2713_v3 = vmax.f32 %v1021_v51, 0.0  ;;  %v1025_v7 = vadd.f32 %v1024_v4, %v936_v6 }
 0x1d0   : > { %v1026_v53 = vpop.f32.mrf.mxu1 }
 0x1d1   : > { %1085 = vrot.lane.b32.xlu0 %v2669_v31, %s2066_s17  ;;  %v1027_v55 = vadd.f32 %v1026_v53, %v938_v54  ;;  %v2735_v56 = vmax.f32 %v1025_v7, 0.0 }
 0x1d3   : > { %1037 = vrot.lane.b32.xlu1 %v2667_v28, %s2067_s18  ;;  %v2739_v57 = vmax.f32 %v1027_v55, 0.0 }
 0x1d5   : > { %1045 = vrot.lane.b32.xlu0 %v2669_v31, %s2067_s18 }
 0x1d7   : > { %1159 = vrot.lane.b32.xlu1 %v2685_v43, %s2064_s15 }
 0x1d9   : > { %1167 = vrot.lane.b32.xlu0 %v2689_v44, %s2064_s15 }
 0x1db   : > { %1119 = vrot.lane.b32.xlu1 %v2685_v43, %s2065_s16 }
 0x1dd   : > { %1127 = vrot.lane.b32.xlu0 %v2689_v44, %s2065_s16 }
 0x1df   : > { %1079 = vrot.lane.b32.xlu1 %v2685_v43, %s2066_s17 }
 0x1e1   : > { %1087 = vrot.lane.b32.xlu0 %v2689_v44, %s2066_s17 }
 0x1e3   : > { %1039 = vrot.lane.b32.xlu1 %v2685_v43, %s2067_s18 }
 0x1e5   : > { %1047 = vrot.lane.b32.xlu0 %v2689_v44, %s2067_s18 }
 0x1e7   : > { %1287 = vrot.lane.b32.xlu1 %v2685_v43, %s2068_s19 }
 0x1e9   : > { %1295 = vrot.lane.b32.xlu0 %v2689_v44, %s2068_s19 }
 0x1eb   : > { %1161 = vrot.lane.b32.xlu1 %v2709_v52, %s2064_s15 }
 0x1ed   : > { %1169 = vrot.lane.b32.xlu0 %v2713_v3, %s2064_s15 }
 0x1ef   : > { %1121 = vrot.lane.b32.xlu1 %v2709_v52, %s2065_s16 }
 0x1f1   : > { %1129 = vrot.lane.b32.xlu0 %v2713_v3, %s2065_s16 }
 0x1f3   : > { %1081 = vrot.lane.b32.xlu1 %v2709_v52, %s2066_s17 }
 0x1f5   : > { %1089 = vrot.lane.b32.xlu0 %v2713_v3, %s2066_s17 }
 0x1f7   : > { %1041 = vrot.lane.b32.xlu1 %v2709_v52, %s2067_s18 }
 0x1f9   : > { %1049 = vrot.lane.b32.xlu0 %v2713_v3, %s2067_s18 }
 0x1fb   : > { %1289 = vrot.lane.b32.xlu1 %v2709_v52, %s2068_s19 }
 0x1fd   : > { %1297 = vrot.lane.b32.xlu0 %v2713_v3, %s2068_s19 }
 0x1ff   : > { %1163 = vrot.lane.b32.xlu1 %v2735_v56, %s2064_s15 }
 0x201   : > { %1171 = vrot.lane.b32.xlu0 %v2739_v57, %s2064_s15 }
 0x203   : > { %1285 = vrot.lane.b32.xlu1 %v2667_v28, %s2068_s19 }
 0x205   : > { %1293 = vrot.lane.b32.xlu0 %v2669_v31, %s2068_s19 }
 0x207   : > { %1123 = vrot.lane.b32.xlu1 %v2735_v56, %s2065_s16 }
 0x209   : > { %1131 = vrot.lane.b32.xlu0 %v2739_v57, %s2065_s16 }
 0x20b   : > { %1083 = vrot.lane.b32.xlu1 %v2735_v56, %s2066_s17 }
 0x20d   : > { %1257 = vrot.lane.b32.xlu0 %v2713_v3, %s2069_s20 }
 0x20f   : > { %1043 = vrot.lane.b32.xlu1 %v2735_v56, %s2067_s18 }
 0x211   : > { %1091 = vrot.lane.b32.xlu0 %v2739_v57, %s2066_s17 }
 0x213   : > { %1291 = vrot.lane.b32.xlu1 %v2735_v56, %s2068_s19 }
 0x215   : > { %1255 = vrot.lane.b32.xlu0 %v2689_v44, %s2069_s20 }
 0x217   : > { %1251 = vrot.lane.b32.xlu1 %v2735_v56, %s2069_s20 }
 0x219   : > { %1051 = vrot.lane.b32.xlu0 %v2739_v57, %s2067_s18 }
 0x21b   : > { %1249 = vrot.lane.b32.xlu1 %v2709_v52, %s2069_s20 }
 0x21d   : > { %1253 = vrot.lane.b32.xlu0 %v2669_v31, %s2069_s20 }
 0x21f   : > { %1247 = vrot.lane.b32.xlu1 %v2685_v43, %s2069_s20 }
 0x221   : > { %1299 = vrot.lane.b32.xlu0 %v2739_v57, %s2068_s19 }
 0x223   : > { %1245 = vrot.lane.b32.xlu1 %v2667_v28, %s2069_s20 }
 0x225   : > { %1217 = vrot.lane.b32.xlu0 %v2713_v3, %s2070_s21 }
 0x227   : > { %1211 = vrot.lane.b32.xlu1 %v2735_v56, %s2070_s21 }
 0x229   : > { %1259 = vrot.lane.b32.xlu0 %v2739_v57, %s2069_s20 }
 0x22b   : > { %1209 = vrot.lane.b32.xlu1 %v2709_v52, %s2070_s21 }
 0x22d   : > { %1215 = vrot.lane.b32.xlu0 %v2689_v44, %s2070_s21 }
 0x22f   : > { %1207 = vrot.lane.b32.xlu1 %v2685_v43, %s2070_s21 }
 0x231   : > { %1219 = vrot.lane.b32.xlu0 %v2739_v57, %s2070_s21 }
 0x233   : > { %1205 = vrot.lane.b32.xlu1 %v2667_v28, %s2070_s21 }
 0x235   : > { %1213 = vrot.lane.b32.xlu0 %v2669_v31, %s2070_s21 }
 0x237   : > { %1331 = vrot.lane.b32.xlu1 %v2735_v56, %s2071_s24 }
 0x239   : > { %1337 = vrot.lane.b32.xlu0 %v2713_v3, %s2071_s24  ;;  %v2804_v60 = vpop.permute.xlu1 %1157 }
 0x23b   : > { %v2806_v61 = vpop.permute.xlu0 %1165  ;;  %1329 = vrot.lane.b32.xlu1 %v2709_v52, %s2071_s24 }
 0x23d   : > { %1339 = vrot.lane.b32.xlu0 %v2739_v57, %s2071_s24  ;;  %v1118_v62 = vpop.permute.xlu1 %1117 }
 0x23f   : > { %v1126_v63 = vpop.permute.xlu0 %1125  ;;  %1327 = vrot.lane.b32.xlu1 %v2685_v43, %s2071_s24 }
 0x240   : > { %v2816_v10 = vsel %vm468_vm5, %v1118_v62, %v1126_v63  ;;  %v2820_v12 = vsel %vm468_vm5, %v1126_v63, %v1118_v62 }
 0x241   : > { %1335 = vrot.lane.b32.xlu0 %v2689_v44, %s2071_s24  ;;  %v1078_v13 = vpop.permute.xlu1 %1077 }
 0x243   : > { %v1086_v14 = vpop.permute.xlu0 %1085  ;;  %1325 = vrot.lane.b32.xlu1 %v2667_v28, %s2071_s24 }
 0x244   : > { %v2828_v15 = vsel %vm423_vm8, %v1086_v14, %v1078_v13  ;;  %v2835_v19 = vsel %vm423_vm8, %v1078_v13, %v1086_v14 }
 0x245   : > { %1333 = vrot.lane.b32.xlu0 %v2669_v31, %s2071_s24  ;;  %v1038_v21 = vpop.permute.xlu1 %1037 }
 0x247   : > { %v1046_v23 = vpop.permute.xlu0 %1045  ;;  %1455 = vperm.xlu1 %2031, %v1449_v18  }
 0x248   : > { %v2844_v24 = vsel %vm378_vm9, %v1038_v21, %v1046_v23  ;;  %v2848_v26 = vsel %vm378_vm9, %v1046_v23, %v1038_v21  ;;  %v1173_v21 = vsel %vm513_vm0, %v2804_v60, %v2806_v61 }
 0x249   : > { %1460 = vperm.xlu0 %2030, %v1450_v22   ;;  %v1160_v30 = vpop.permute.xlu1 %1159  ;;  %v1177_v22 = vsel %vm513_vm0, %v2806_v61, %v2804_v60 }
 0x24b   : > { %v1168_v33 = vpop.permute.xlu0 %1167  ;;  %1465 = vperm.xlu1 %2031, %v1451_v27  }
 0x24c   : > { %v1174_v13 = vsel %vm513_vm0, %v1160_v30, %v1168_v33  ;;  %v1178_v14 = vsel %vm513_vm0, %v1168_v33, %v1160_v30 }
 0x24d   : > { %1470 = vperm.xlu0 %2030, %v1452_v32   ;;  %v1120_v34 = vpop.permute.xlu1 %1119 }
 0x24f   : > { %v1128_v35 = vpop.permute.xlu0 %1127 }
 0x251   : > { %v2856_v36 = vpop.permute.xlu1 %1079 }
 0x253   : > { %v2858_v38 = vpop.permute.xlu0 %1087 }
 0x254   : > { %v1094_v40 = vsel %vm423_vm8, %v2856_v36, %v2858_v38 }
 0x255   : > { %v2860_v39 = vpop.permute.xlu1 %1039 }
 0x257   : > { %v2862_v41 = vpop.permute.xlu0 %1047 }
 0x259   : > { %v2864_v42 = vpop.permute.xlu1 %1287 }
 0x25b   : > { %v2866_v45 = vpop.permute.xlu0 %1295 }
 0x25d   : > { %v1162_v47 = vpop.permute.xlu1 %1161 }
 0x25f   : > { %v1170_v48 = vpop.permute.xlu0 %1169 }
 0x260   : > { %v1175_v58 = vsel %vm513_vm0, %v1162_v47, %v1170_v48  ;;  %v1179_v62 = vsel %vm513_vm0, %v1170_v48, %v1162_v47  ;;  %v1134_v47 = vsel %vm468_vm5, %v1120_v34, %v1128_v35  ;;  %v1138_v48 = vsel %vm468_vm5, %v1128_v35, %v1120_v34 }
 0x261   : > { %v1122_v49 = vpop.permute.xlu1 %1121 }
 0x263   : > { %v1130_v50 = vpop.permute.xlu0 %1129 }
 0x264   : > { %v1135_v60 = vsel %vm468_vm5, %v1122_v49, %v1130_v50  ;;  %v1139_v61 = vsel %vm468_vm5, %v1130_v50, %v1122_v49 }
 0x265   : > { %v1082_v2 = vpop.permute.xlu1 %1081 }
 0x267   : > { %v1090_v0 = vpop.permute.xlu0 %1089 }
 0x269   : > { %v2868_v51 = vpop.permute.xlu1 %1041 }
 0x26b   : > { %v2870_v1 = vpop.permute.xlu0 %1049 }
 0x26d   : > { %v2872_v4 = vpop.permute.xlu1 %1289 }
 0x26f   : > { %v2874_v5 = vpop.permute.xlu0 %1297 }
 0x271   : > { %v1164_v6 = vpop.permute.xlu1 %1163 }
 0x273   : > { %v1172_v53 = vpop.permute.xlu0 %1171 }
 0x274   : > { %v1176_v54 = vsel %vm513_vm0, %v1164_v6, %v1172_v53  ;;  %v1180_v7 = vsel %vm513_vm0, %v1172_v53, %v1164_v6  ;;  %v1095_v53 = vsel %vm423_vm8, %v1082_v2, %v1090_v0  ;;  %vm3345_vm0 = vcmp.lt.s32.totalorder %v2275_v9, 112 }
 0x275   : > { %1948 = vmatprep.subr.msk.mxu1 %vm2299_vm1, %v1176_v54  ;;  %v2882_v55 = vpop.permute.xlu1 %1285 }
 0x276   : > { %1949 = vmatpush1.msk.msra.mxu1 %vm2303_vm2, %v1180_v7 }
 0x277   : > { %v2890_v63 = vpop.permute.xlu0 %1293  ;;  %1950 = vmatprep.subr.msk.mxu1 %vm2299_vm1, %v1175_v58 }
 0x278   : > { %1951 = vmatpush1.msk.msra.mxu1 %vm2303_vm2, %v1179_v62 }
 0x279   : > { %1952 = vmatprep.subr.msk.mxu1 %vm2299_vm1, %v1174_v13  ;;  %v1124_v18 = vpop.permute.xlu1 %1123  ;;  %v1058_v13 = vsel %vm378_vm9, %v2862_v41, %v2860_v39 }
 0x27a   : > { %1953 = vmatpush1.msk.msra.mxu1 %vm2303_vm2, %v1178_v14 }
 0x27b   : > { %v1132_v23 = vpop.permute.xlu0 %1131  ;;  %1954 = vmatprep.subr.msk.mxu1 %vm2299_vm1, %v1173_v21 }
 0x27c   : > { %v1136_v27 = vsel %vm468_vm5, %v1124_v18, %v1132_v23  ;;  %v1140_v30 = vsel %vm468_vm5, %v1132_v23, %v1124_v18  ;;  %1955 = vmatpush1.msk.msra.mxu1 %vm2303_vm2, %v1177_v22  ;;  %vm3347_vm5 = vmmov %vm3345_vm0 }
 0x27d   : > { %1956 = vmatprep.subr.msk.mxu1 %vm2359_vm6, %v1136_v27  ;;  %v1084_v32 = vpop.permute.xlu1 %1083  ;;  %v1307_v17 = vsel %vm3347_vm5, %v2874_v5, %v2872_v4 }
 0x27e   : > { %1957 = vmatpush1.msk.msra.mxu1 %vm2367_vm7, %v1140_v30 }
 0x27f   : > { %v2928_v33 = vpop.permute.xlu0 %1257  ;;  %1958 = vmatprep.subr.msk.mxu1 %vm2359_vm6, %v1135_v60 }
 0x280   : > { %1959 = vmatpush1.msk.msra.mxu1 %vm2367_vm7, %v1139_v61 }
 0x281   : > { %1960 = vmatprep.subr.msk.mxu1 %vm2359_vm6, %v1134_v47  ;;  %v1044_v6 = vpop.permute.xlu1 %1043 }
 0x282   : > { %1961 = vmatpush1.msk.msra.mxu1 %vm2367_vm7, %v1138_v48 }
 0x283   : > { %v1092_v49 = vpop.permute.xlu0 %1091  ;;  %1962 = vmatprep.subr.msk.mxu1 %vm2359_vm6, %v2816_v10  ;;  %v1099_v10 = vsel %vm423_vm8, %v1090_v0, %v1082_v2 }
 0x284   : > { %v1100_v50 = vsel %vm423_vm8, %v1092_v49, %v1084_v32  ;;  %1963 = vmatpush1.msk.msra.mxu1 %vm2367_vm7, %v2820_v12  ;;  %v1096_v34 = vsel %vm423_vm8, %v1084_v32, %v1092_v49  ;;  %v1098_v12 = vsel %vm423_vm8, %v2858_v38, %v2856_v36  ;;  %v1055_v38 = vsel %vm378_vm9, %v2868_v51, %v2870_v1  ;;  %vm3349_vm7 = vmmov %vm3345_vm0 }
 0x285   : > { %1501 = vmatprep.subr.mxu1 %v1096_v34  ;;  %v1292_v35 = vpop.permute.xlu1 %1291  ;;  %v1306_v25 = vsel %vm3349_vm7, %v2866_v45, %v2864_v42  ;;  %vm3350_vm8 = vmmov %vm3345_vm0 }
 0x286   : > { %1964 = vmatpush1.msk.msra.mxu1 %vm338_vm4, %v1100_v50 }
 0x287   : > { %v1256_v54 = vpop.permute.xlu0 %1255  ;;  %1503 = vmatprep.subr.mxu1 %v1095_v53 }
 0x288   : > { %1965 = vmatpush1.msk.msra.mxu1 %vm338_vm4, %v1099_v10 }
 0x289   : > { %1505 = vmatprep.subr.mxu1 %v1094_v40  ;;  %v1252_v7 = vpop.permute.xlu1 %1251 }
 0x28a   : > { %1966 = vmatpush1.msk.msra.mxu1 %vm338_vm4, %v1098_v12 }
 0x28b   : > { %v1052_v2 = vpop.permute.xlu0 %1051  ;;  %1507 = vmatprep.subr.mxu1 %v2835_v19  ;;  %v1059_v19 = vsel %vm378_vm9, %v2870_v1, %v2868_v51 }
 0x28c   : > { %v1056_v0 = vsel %vm378_vm9, %v1044_v6, %v1052_v2  ;;  %v1060_v58 = vsel %vm378_vm9, %v1052_v2, %v1044_v6  ;;  %1967 = vmatpush1.msk.msra.mxu1 %vm338_vm4, %v2828_v15  ;;  %v1054_v15 = vsel %vm378_vm9, %v2860_v39, %v2862_v41  ;;  %vm3346_vm4 = vmmov %vm3345_vm0 }
 0x28d   : > { %1968 = vmatprep.subr.msk.mxu1 %vm2299_vm1, %v1056_v0  ;;  %v1250_v36 = vpop.permute.xlu1 %1249  ;;  %vm3351_vm9 = vmmov %vm3345_vm0 }
 0x28e   : > { %1969 = vmatpush1.msk.msra.mxu1 %vm2439_vm10, %v1060_v58 }
 0x28f   : > { %v1254_v62 = vpop.permute.xlu0 %1253  ;;  %1970 = vmatprep.subr.msk.mxu1 %vm2299_vm1, %v1055_v38 }
 0x290   : > { %1971 = vmatpush1.msk.msra.mxu1 %vm2439_vm10, %v1059_v19  ;;  %v1367_v19 = vld [vmem:[%s3319_s3 + $0x10] sm:$0xff] }
 0x291   : > { %1972 = vmatprep.subr.msk.mxu1 %vm2299_vm1, %v1054_v15  ;;  %v1248_v51 = vpop.permute.xlu1 %1247  ;;  %v1375_v15 = vld [vmem:[%s3319_s3 + $0x50] sm:$0xff] }
 0x292   : > { %1973 = vmatpush1.msk.msra.mxu1 %vm2439_vm10, %v1058_v13  ;;  %v1374_v13 = vld [vmem:[%s3319_s3 + $0x48] sm:$0xff] }
 0x293   : > { %v1300_v1 = vpop.permute.xlu0 %1299  ;;  %1974 = vmatprep.subr.msk.mxu1 %vm2299_vm1, %v2844_v24  ;;  %vm3348_vm1 = vmmov %vm3345_vm0 }
 0x294   : > { %v1304_v14 = vsel %vm3345_vm0, %v1292_v35, %v1300_v1  ;;  %v1308_v18 = vsel %vm3346_vm4, %v1300_v1, %v1292_v35  ;;  %1975 = vmatpush1.msk.msra.mxu1 %vm2439_vm10, %v2848_v26  ;;  %v1303_v24 = vsel %vm3348_vm1, %v2872_v4, %v2874_v5  ;;  %v1302_v26 = vsel %vm3350_vm8, %v2864_v42, %v2866_v45  ;;  %vm3352_vm10 = vmmov %vm3345_vm0 }
 0x295   : > { %1976 = vmatprep.subr.msk.mxu1 %vm341_vm12, %v1308_v18  ;;  %v1246_v39 = vpop.permute.xlu1 %1245  ;;  %v1305_v4 = vsel %vm3351_vm9, %v2890_v63, %v2882_v55  ;;  %v1301_v5 = vsel %vm3352_vm10, %v2882_v55, %v2890_v63  ;;  %vm3353_vm0 = vcmp.lt.s32.totalorder %v2275_v9, 113  ;;  %vm3361_vm10 = vcmp.lt.s32.totalorder %v2275_v9, 127  ;;  %v1371_v9 = vld [vmem:[%s3319_s3 + $0x30] sm:$0xff] }
 0x296   : > { %1518 = vmatpush2.msra.mxu1 %v1304_v14  ;;  %vm3354_vm4 = vmmov %vm3353_vm0 }
 0x297   : > { %v1218_v41 = vpop.permute.xlu0 %1217  ;;  %1977 = vmatprep.subr.msk.mxu1 %vm341_vm12, %v1307_v17  ;;  %vm3355_vm5 = vmmov %vm3353_vm0 }
 0x298   : > { %1520 = vmatpush2.msra.mxu1 %v1303_v24  ;;  %v1267_v27 = vsel %vm3355_vm5, %v2928_v33, %v1250_v36  ;;  %vm3357_vm1 = vmmov %vm3353_vm0 }
 0x299   : > { %1978 = vmatprep.subr.msk.mxu1 %vm341_vm12, %v1306_v25  ;;  %v1212_v21 = vpop.permute.xlu1 %1211  ;;  %v1266_v63 = vsel %vm3357_vm1, %v1256_v54, %v1248_v51  ;;  %vm3358_vm7 = vmmov %vm3353_vm0 }
 0x29a   : > { %1522 = vmatpush2.msra.mxu1 %v1302_v26  ;;  %v1262_v30 = vsel %vm3358_vm7, %v1248_v51, %v1256_v54  ;;  %vm3359_vm8 = vmmov %vm3353_vm0  ;;  %v1376_v51 = vld [vmem:[%s3319_s3 + $0x58] sm:$0xff] }
 0x29b   : > { %v1260_v22 = vpop.permute.xlu0 %1259  ;;  %1979 = vmatprep.subr.msk.mxu1 %vm341_vm12, %v1305_v4  ;;  %vm3356_vm12 = vmmov %vm3353_vm0  ;;  %v1265_v60 = vsel %vm3359_vm8, %v1254_v62, %v1246_v39 }
 0x29c   : > { %v1264_v42 = vsel %vm3353_vm0, %v1252_v7, %v1260_v22  ;;  %v1268_v45 = vsel %vm3354_vm4, %v1260_v22, %v1252_v7  ;;  %1524 = vmatpush2.msra.mxu1 %v1301_v5  ;;  %v1263_v11 = vsel %vm3356_vm12, %v1250_v36, %v2928_v33  ;;  %vm3360_vm9 = vmmov %vm3353_vm0 }
 0x29d   : > { %1980 = vmatprep.subr.msk.mxu1 %vm2506_vm14, %v1268_v45  ;;  %v1210_v23 = vpop.permute.xlu1 %1209  ;;  %v1261_v61 = vsel %vm3360_vm9, %v1246_v39, %v1254_v62  ;;  %vm3362_vm0 = vmmov %vm3361_vm10  ;;  %v1372_v62 = vld [vmem:[%s3319_s3 + $0x38] sm:$0xff] }
 0x29e   : > { %1981 = vmatpush2.msk.msra.mxu1 %vm2303_vm2, %v1264_v42  ;;  %vm3363_vm4 = vmmov %vm3362_vm0 }
 0x29f   : > { %v1216_v55 = vpop.permute.xlu0 %1215  ;;  %1982 = vmatprep.subr.msk.mxu1 %vm2506_vm14, %v1267_v27  ;;  %v1227_v49 = vsel %vm3363_vm4, %v1218_v41, %v1210_v23  ;;  %vm3365_vm5 = vmmov %vm3362_vm0 }
 0x2a0   : > { %1983 = vmatpush2.msk.msra.mxu1 %vm2303_vm2, %v1263_v11  ;;  %vm3367_vm12 = vmmov %vm3362_vm0 }
 0x2a1   : > { %1984 = vmatprep.subr.msk.mxu1 %vm2506_vm14, %v1266_v63  ;;  %v1208_v32 = vpop.permute.xlu1 %1207  ;;  %vm3368_vm1 = vmmov %vm3362_vm0 }
 0x2a2   : > { %1985 = vmatpush2.msk.msra.mxu1 %vm2303_vm2, %v1262_v30  ;;  %v1226_v20 = vsel %vm3365_vm5, %v1216_v55, %v1208_v32 }
 0x2a3   : > { %v1220_v33 = vpop.permute.xlu0 %1219  ;;  %1986 = vmatprep.subr.msk.mxu1 %vm2506_vm14, %v1265_v60  ;;  %vm3364_vm14 = vmmov %vm3362_vm0 }
 0x2a4   : > { %v1224_v47 = vsel %vm3361_vm10, %v1212_v21, %v1220_v33  ;;  %v1228_v48 = vsel %vm3362_vm0, %v1220_v33, %v1212_v21  ;;  %1987 = vmatpush2.msk.msra.mxu1 %vm2303_vm2, %v1261_v61  ;;  %v1223_v59 = vsel %vm3364_vm14, %v1210_v23, %v1218_v41  ;;  %vm3366_vm2 = vmmov %vm3362_vm0 }
 0x2a5   : > { %1988 = vmatprep.subr.msk.mxu1 %vm2359_vm6, %v1228_v48  ;;  %v1206_v6 = vpop.permute.xlu1 %1205  ;;  %v1222_v34 = vsel %vm3366_vm2, %v1208_v32, %v1216_v55 }
 0x2a6   : > { %1989 = vmatpush2.msk.msra.mxu1 %vm2339_vm3, %v1224_v47 }
 0x2a7   : > { %v1214_v50 = vpop.permute.xlu0 %1213  ;;  %1990 = vmatprep.subr.msk.mxu1 %vm2359_vm6, %v1227_v49 }
 0x2a8   : > { %1991 = vmatpush2.msk.msra.mxu1 %vm2339_vm3, %v1223_v59  ;;  %v1225_v53 = vsel %vm3367_vm12, %v1214_v50, %v1206_v6  ;;  %v1221_v10 = vsel %vm3368_vm1, %v1206_v6, %v1214_v50 }
 0x2a9   : > { %1992 = vmatprep.subr.msk.mxu1 %vm2359_vm6, %v1226_v20  ;;  %v1332_v35 = vpop.permute.xlu1 %1331 }
 0x2aa   : > { %1993 = vmatpush2.msk.msra.mxu1 %vm2339_vm3, %v1222_v34 }
 0x2ab   : > { %v1338_v54 = vpop.permute.xlu0 %1337  ;;  %1994 = vmatprep.subr.msk.mxu1 %vm2359_vm6, %v1225_v53 }
 0x2ac   : > { %1995 = vmatpush2.msk.msra.mxu1 %vm2339_vm3, %v1221_v10 }
 0x2ad   : > { %1541 = vmatprep.subr.mxu1 %v2739_v57  ;;  %v1330_v40 = vpop.permute.xlu1 %1329 }
 0x2ae   : > { %1542 = vmatpush2.msra.mxu1 %v2735_v56  ;;  %v1347_v56 = vsel %vm701_vm13, %v1338_v54, %v1330_v40 }
 0x2af   : > { %v1340_v12 = vpop.permute.xlu0 %1339  ;;  %1543 = vmatprep.subr.mxu1 %v2713_v3  ;;  %v1365_v3 = vld [vmem:[%s3319_s3] sm:$0xff] }
 0x2b0   : > { %v1344_v7 = vsel %vm701_vm13, %v1332_v35, %v1340_v12  ;;  %v1348_v2 = vsel %vm701_vm13, %v1340_v12, %v1332_v35  ;;  %1544 = vmatpush2.msra.mxu1 %v2709_v52  ;;  %v1343_v52 = vsel %vm701_vm13, %v1330_v40, %v1338_v54 }
 0x2b1   : > { %1545 = vmatprep.subr.mxu1 %v2689_v44  ;;  %1996 = vmatprep.subr.msk.mxu0 %vm2580_vm11, %v1348_v2  ;;  %v1328_v37 = vpop.permute.xlu1 %1327 }
 0x2b2   : > { %1546 = vmatpush2.msra.mxu1 %v2685_v43  ;;  %1997 = vmatpush1.msk.msra.mxu0 %vm2339_vm3, %v1344_v7 }
 0x2b3   : > { %v1336_v44 = vpop.permute.xlu0 %1335  ;;  %1547 = vmatprep.subr.mxu1 %v2669_v31  ;;  %1998 = vmatprep.subr.msk.mxu0 %vm2580_vm11, %v1347_v56  ;;  %v1369_v31 = vld [vmem:[%s3319_s3 + $0x20] sm:$0xff] }
 0x2b4   : > { %v1342_v57 = vsel %vm701_vm13, %v1328_v37, %v1336_v44  ;;  %v1346_v43 = vsel %vm701_vm13, %v1336_v44, %v1328_v37  ;;  %1548 = vmatpush2.msra.mxu1 %v2667_v28  ;;  %1999 = vmatpush1.msk.msra.mxu0 %vm2339_vm3, %v1343_v52  ;;  %v1368_v28 = vld [vmem:[%s3319_s3 + $0x18] sm:$0xff]  ;;  %v1679_v37 = vld [vmem:[%s3321_s5] sm:$0xff] }
 0x2b5   : > { %1550 = vmatmul.mubr.f32.vlgmr.msra.gmra.mxu1 %v1365_v3  ;;  %2004 = vmatprep.subr.msk.mxu1 %vm2580_vm11, %v1348_v2  ;;  %v1326_v0 = vpop.permute.xlu1 %1325 }
 0x2b6   : > { %2000 = vmatprep.subr.msk.mxu0 %vm2580_vm11, %v1346_v43  ;;  %2008 = vmatpush1.msk.msra.mxu1 %vm2339_vm3, %v1344_v7 }
 0x2b7   : > { %2001 = vmatpush1.msk.msra.mxu0 %vm2339_vm3, %v1342_v57  ;;  %v1334_v58 = vpop.permute.xlu0 %1333  ;;  %2005 = vmatprep.subr.msk.mxu1 %vm2580_vm11, %v1347_v56  ;;  %v1680_v56 = vld [vmem:[%s3321_s5 + $0x8] sm:$0xff] }
 0x2b8   : > { %v1341_v36 = vsel %vm701_vm13, %v1326_v0, %v1334_v58  ;;  %v1345_v38 = vsel %vm701_vm13, %v1334_v58, %v1326_v0  ;;  %1555 = vmatprep.mubr.f32.mxu1 %v1369_v31  ;;  %2009 = vmatpush1.msk.msra.mxu1 %vm2339_vm3, %v1343_v52  ;;  %v1682_v58 = vld [vmem:[%s3321_s5 + $0x18] sm:$0xff] }
 0x2b9   : > { %1556 = vmatmul.mubr.f32.gmra.mxu1 %v1368_v28  ;;  %2006 = vmatprep.subr.msk.mxu1 %vm2580_vm11, %v1346_v43  ;;  %v1681_v43 = vld [vmem:[%s3321_s5 + $0x10] sm:$0xff] }
 0x2ba   : > { %2002 = vmatprep.subr.msk.mxu0 %vm2580_vm11, %v1345_v38  ;;  %2010 = vmatpush1.msk.msra.mxu1 %vm2339_vm3, %v1342_v57 }
 0x2bb   : > { %2003 = vmatpush1.msk.msra.mxu0 %vm2339_vm3, %v1341_v36  ;;  %2007 = vmatprep.subr.msk.mxu1 %vm2580_vm11, %v1345_v38 }
 0x2bc   : > { %1880 = vmatmul.mubr.msk.f32.vlgmr.msra.gmra.mxu0 %vm838_vm15, %v1367_v19  ;;  %1561 = vmatprep.mubr.f32.mxu1 %v1372_v62 }
 0x2bd   : > { %2011 = vmatpush1.msk.msra.mxu1 %vm2339_vm3, %v1341_v36  ;;  %1644 = vmatprep.mubr.f32.mxu0 %v2072_v16  ;;  %vm1687_vm3 = vcmask 15360  }
 0x2be   : > { %1562 = vmatmul.mubr.f32.gmra.mxu1 %v1371_v9 }
 0x2bf   : > { %1567 = vmatprep.mubr.f32.mxu1 %v1375_v15 }
 0x2c0   : > { %1881 = vmatmul.mubr.msk.f32.gmra.mxu0 %vm838_vm15, %v1370_v46 }
 0x2c1   : > { %1650 = vmatprep.mubr.f32.mxu0 %v2072_v16 }
 0x2c2   : > { %1568 = vmatmul.mubr.f32.gmra.mxu1 %v1374_v13  ;;  %v1456_v17 = vpop.permute.xlu1 %1455 }
 0x2c3   : > { %1656 = vmatprep.mubr.f32.mxu1 %v2072_v16 }
 0x2c4   : > { %1882 = vmatmul.mubr.msk.f32.gmra.mxu0 %vm838_vm15, %v1373_v29  ;;  %v1461_v4 = vpop.permute.xlu0 %1460 }
 0x2c6   : > { %1883 = vmatmul.mubr.msk.f32.vlgmr.msra.gmra.mxu1 %vm838_vm15, %v1376_v51  ;;  %v1466_v63 = vpop.permute.xlu1 %1465 }
 0x2c8   : > { %v1471_v33 = vpop.permute.xlu0 %1470 }
 0x375   : > { %v1551_v1 = vpop.f32.mrf.mxu1 }
 0x376   : > { %v1552_v41 = vadd.f32 %v1551_v1, %v1456_v17 }
 0x377   : > { %v1553_v14 = vpop.f32.mrf.mxu1 }
 0x378   : > { %v1554_v25 = vadd.f32 %v1553_v14, %v1456_v17 }
 0x379   : > { %v1557_v18 = vpop.f32.mrf.mxu1 }
 0x37a   : > { %v1558_v45 = vadd.f32 %v1557_v18, %v1461_v4 }
 0x37b   : > { %v1559_v39 = vpop.f32.mrf.mxu1 }
 0x37c   : > { %v1640_v24 = vpop.f32.mrf.mxu0  ;;  %v1560_v23 = vadd.f32 %v1559_v39, %v1461_v4 }
 0x37d   : > { %v3210_v16 = vadd.f32 %v1640_v24, %v1552_v41  ;;  %v1709_v24 = vshrl.u32 %v333_v8, 7  ;;  %v1701_v41 = vld [vmem:[%s3322_s6] sm:$0x1]  ;;  %v1707_v8 = vld [vmem:[%s3323_s7 + $0x18] sm:$0xff] }
 0x37e   : > { %v1563_v26 = vpop.f32.mrf.mxu1  ;;  %v1642_v21 = vpop.f32.mrf.mxu0 }
 0x37f   : > { %v3212_v5 = vadd.f32 %v1642_v21, %v1554_v25  ;;  %v1564_v47 = vadd.f32 %v1563_v26, %v1466_v63  ;;  %v1710_v21 = vsub.s32 0, %v1709_v24 }
 0x380   : > { %v1565_v22 = vpop.f32.mrf.mxu1  ;;  %v1646_v42 = vpop.f32.mrf.mxu0 }
 0x381   : > { %v1663_v27 = vadd.f32 %v3212_v5, %v3210_v16  ;;  %v3216_v30 = vadd.f32 %v1646_v42, %v1558_v45  ;;  %v1566_v48 = vadd.f32 %v1565_v22, %v1466_v63  ;;  %v1705_v22 = vld [vmem:[%s3323_s7 + $0x8] sm:$0xff]  ;;  %v1704_v42 = vld [vmem:[%s3323_s7] sm:$0xff] }
 0x382   : > { %v1569_v11 = vpop.f32.mrf.mxu1  ;;  %v1648_v55 = vpop.f32.mrf.mxu0 }
 0x383   : > { %v3218_v32 = vadd.f32 %v1648_v55, %v1560_v23  ;;  %1664 = vadd.xlane.f32.xlu1 %v1663_v27  ;;  %v1570_v50 = vadd.f32 %v1569_v11, %v1471_v33  ;;  %v1706_v23 = vld [vmem:[%s3323_s7 + $0x10] sm:$0xff] }
 0x384   : > { %v1571_v60 = vpop.f32.mrf.mxu1  ;;  %v1652_v61 = vpop.f32.mrf.mxu0 }
 0x385   : > { %v1666_v6 = vadd.f32 %v3218_v32, %v3216_v30  ;;  %v1572_v20 = vadd.f32 %v1571_v60, %v1471_v33  ;;  %v3222_v34 = vadd.f32 %v1652_v61, %v1564_v47 }
 0x386   : > { %v1654_v49 = vpop.f32.mrf.mxu0  ;;  %v1658_v59 = vpop.f32.mrf.mxu1 }
 0x387   : > { %v3224_v35 = vadd.f32 %v1654_v49, %v1566_v48  ;;  %1667 = vadd.xlane.f32.xlu0 %v1666_v6  ;;  %v3228_v54 = vadd.f32 %v1658_v59, %v1570_v50  ;;  %v1729_v48 = vld [vmem:[%s3324_s8 + $0x8] sm:$0xff]  ;;  %v1728_v6 = vld [vmem:[%s3324_s8] sm:$0xff] }
 0x388   : > { %v1660_v53 = vpop.f32.mrf.mxu1 }
 0x389   : > { %v1669_v10 = vadd.f32 %v3224_v35, %v3222_v34  ;;  %v3230_v40 = vadd.f32 %v1660_v53, %v1572_v20  ;;  %v1731_v53 = vld [vmem:[%s3324_s8 + $0x18] sm:$0xff] }
 0x38b   : > { %v1672_v12 = vadd.f32 %v3230_v40, %v3228_v54  ;;  %1670 = vadd.xlane.f32.xlu0 %v1669_v10  ;;  %v1730_v10 = vld [vmem:[%s3324_s8 + $0x10] sm:$0xff] }
 0x38d   : > { %1673 = vadd.xlane.f32.xlu1 %v1672_v12 }
 0x40c   : > { %v1665_v7 = vpop.xlane.xlu1 %1664 }
 0x40d   : > { %v1675_v2 = vmul.f32 0.00390625, %v1665_v7 }
 0x40f   : > { %v1683_v44 = vmul.f32 %v1679_v37, %v1675_v2 }
 0x410   : > { %v1668_v3 = vpop.xlane.xlu0 %1667 }
 0x411   : > { %v1676_v52 = vmul.f32 0.00390625, %v1668_v3  ;;  %v1688_v38 = vsel %vm1687_vm3, %v1683_v44, 0.0 }
 0x413   : > { %v1684_v57 = vmul.f32 %v1680_v56, %v1676_v52 }
 0x414   : > { %v1671_v31 = vpop.xlane.xlu0 %1670 }
 0x415   : > { %v1689_v28 = vsel %vm1687_vm3, %v1684_v57, 0.0  ;;  %v1677_v0 = vmul.f32 0.00390625, %v1671_v31 }
 0x416   : > { %v1674_v36 = vpop.xlane.xlu1 %1673  ;;  %v1690_v9 = vadd.f32 %v1689_v28, %v1688_v38 }
 0x417   : > { %v1685_v19 = vmul.f32 %v1681_v43, %v1677_v0  ;;  %v1678_v62 = vmul.f32 0.00390625, %v1674_v36 }
 0x419   : > { %v1691_v15 = vsel %vm1687_vm3, %v1685_v19, 0.0  ;;  %v1686_v46 = vmul.f32 %v1682_v58, %v1678_v62 }
 0x41a   : > { %v1692_v13 = vadd.f32 %v1691_v15, %v1690_v9 }
 0x41b   : > { %v1693_v29 = vsel %vm1687_vm3, %v1686_v46, 0.0 }
 0x41c   : > { %v1694_v51 = vadd.f32 %v1693_v29, %v1692_v13 }
 0x41e   : > { %v1695_v1 = vrot.slane %v1694_v51, 4 }
 0x420   : > { %v1696_v14 = vadd.f32 %v1695_v1, %v1694_v51 }
 0x422   : > { %v1697_v18 = vrot.slane %v1696_v14, 2 }
 0x424   : > { %v1698_v39 = vadd.f32 %v1697_v18, %v1696_v14  ;;  %v2048_v18 = vld [vmem:[%s2140_s14 + $0x10] sm:$0xff] }
 0x426   : > { %v1699_v17 = vrot.slane %v1698_v39, 1 }
 0x428   : > { %v1700_v25 = vadd.f32 %v1699_v17, %v1698_v39  ;;  %v2049_v17 = vld [vmem:[%s2140_s14 + $0x18] sm:$0xff] }
 0x42a   : > { %v1702_v26 = vadd.f32 %v1701_v41, %v1700_v25  ;;  %v2051_v41 = vld [vmem:[%s2140_s14 + $0x8] sm:$0xff] }
 0x42c   : > { %v1703_v4 = vmax.f32 %v1702_v26, 0.0 }
 0x42e   : > { %v1711_v45 = vrot.slane %v1703_v4, %v1710_v21 }
 0x430   : > { %v1713_v27 = vmul.f32 %v1711_v45, %v1705_v22  ;;  %v1712_v11 = vmul.f32 %v1711_v45, %v1704_v42  ;;  %v1715_v60 = vmul.f32 %v1711_v45, %v1707_v8  ;;  %v1714_v61 = vmul.f32 %v1711_v45, %v1706_v23 }
 0x432   : > { %v1719_v55 = vsel %vm1687_vm3, %v1713_v27, 0.0  ;;  %v1716_v63 = vsel %vm1687_vm3, %v1712_v11, 0.0  ;;  %v1725_v33 = vsel %vm1687_vm3, %v1715_v60, 0.0  ;;  %v1722_v47 = vsel %vm1687_vm3, %v1714_v61, 0.0  ;;  %v2052_v27 = vld [vmem:[%s2140_s14 + $0x20] sm:$0xff]  ;;  %v2054_v60 = vld [vmem:[%s2140_s14 + $0x30] sm:$0xff] }
 0x433   : > { %1720 = vadd.xlane.f32.xlu1 %v1719_v55  ;;  %1717 = vadd.xlane.f32.xlu0 %v1716_v63  ;;  %v2053_v55 = vld [vmem:[%s2140_s14 + $0x28] sm:$0xff]  ;;  %v2055_v61 = vld [vmem:[%s2140_s14 + $0x38] sm:$0xff] }
 0x437   : > { %1726 = vadd.xlane.f32.xlu1 %v1725_v33  ;;  %1723 = vadd.xlane.f32.xlu0 %v1722_v47 }
 0x4bc   : > { %v1721_v49 = vpop.xlane.xlu1 %1720  ;;  %v1718_v59 = vpop.xlane.xlu0 %1717 }
 0x4bd   : > { %v1733_v50 = vadd.f32 %v1729_v48, %v1721_v49  ;;  %v1732_v20 = vadd.f32 %v1728_v6, %v1718_v59 }
 0x4bf   : > { %v1885_v12 = vmul.f32 -1.442695, %v1733_v50  ;;  %v1884_v7 = vmul.f32 -1.442695, %v1732_v20 }
 0x4c0   : > { %v1727_v2 = vpop.xlane.xlu1 %1726  ;;  %v1724_v37 = vpop.xlane.xlu0 %1723 }
 0x4c1   : > { %2032 = vpow2.f32 %v1885_v12  ;;  %v1735_v56 = vadd.f32 %v1731_v53, %v1727_v2  ;;  %v1734_v3 = vadd.f32 %v1730_v10, %v1724_v37 }
 0x4c2   : > { %2034 = vpow2.f32 %v1884_v7 }
 0x4c3   : > { %v1887_v52 = vmul.f32 -1.442695, %v1735_v56  ;;  %v1886_v44 = vmul.f32 -1.442695, %v1734_v3 }
 0x4c5   : > { %2036 = vpow2.f32 %v1887_v52 }
 0x4c6   : > { %2038 = vpow2.f32 %v1886_v44 }
 0x4ce   : > { %v2033_v57 = vpop.eup %2032 }
 0x4cf   : > { %v2035_v43 = vpop.eup %2034  ;;  %v1749_v31 = vadd.f32 1.0, %v2033_v57 }
 0x4d0   : > { %v1748_v28 = vadd.f32 1.0, %v2035_v43 }
 0x4d1   : > { %2040 = vrcp.f32 %v1749_v31 }
 0x4d2   : > { %v2037_v0 = vpop.eup %2036  ;;  %2042 = vrcp.f32 %v1748_v28 }
 0x4d3   : > { %v2039_v58 = vpop.eup %2038  ;;  %v1751_v36 = vadd.f32 1.0, %v2037_v0 }
 0x4d4   : > { %v1750_v38 = vadd.f32 1.0, %v2039_v58 }
 0x4d5   : > { %2044 = vrcp.f32 %v1751_v36 }
 0x4d6   : > { %2046 = vrcp.f32 %v1750_v38 }
 0x4de   : > { %v2041_v19 = vpop.eup %2040 }
 0x4df   : > { %v2043_v62 = vpop.eup %2042  ;;  %1767 = vperm.xlu1 %2031, %v2041_v19  }
 0x4e0   : > { %1762 = vperm.xlu0 %2030, %v2043_v62  }
 0x4e2   : > { %v2045_v9 = vpop.eup %2044 }
 0x4e3   : > { %v2047_v15 = vpop.eup %2046 }
 0x4e4   : > { %1777 = vperm.xlu0 %2030, %v2045_v9   ;;  %1772 = vperm.xlu1 %2031, %v2047_v15  }
 0x55a   : > { %v1768_v46 = vpop.permute.xlu1 %1767 }
 0x55b   : > { %v1782_v13 = vmul.f32 %v1768_v46, %v3216_v30  ;;  %v1783_v29 = vmul.f32 %v1768_v46, %v3218_v32  ;;  %v1763_v51 = vpop.permute.xlu0 %1762  ;;  %v2050_v30 = vld [vmem:[%s2140_s14] sm:$0xff] }
 0x55c   : > { %v1780_v1 = vmul.f32 %v1763_v51, %v3210_v16  ;;  %v1781_v14 = vmul.f32 %v1763_v51, %v3212_v5 }
 0x55d   : > { %v1790_v39 = vadd.f32 %v2048_v18, %v1782_v13  ;;  %v1791_v24 = vadd.f32 %v2049_v17, %v1783_v29 }
 0x55e   : > { %v1788_v32 = vadd.f32 %v2050_v30, %v1780_v1  ;;  %v1789_v16 = vadd.f32 %v2051_v41, %v1781_v14 }
 0x55f   : > { %v1798_v5 = vmax.f32 %v1790_v39, 0.0  ;;  %v1799_v25 = vmax.f32 %v1791_v24, 0.0  ;;  %v1773_v26 = vpop.permute.xlu1 %1772  ;;  %v1778_v21 = vpop.permute.xlu0 %1777 }
 0x560   : > { %v1796_v4 = vmax.f32 %v1788_v32, 0.0  ;;  %v1797_v22 = vmax.f32 %v1789_v16, 0.0  ;;  %v1784_v42 = vmul.f32 %v1773_v26, %v3222_v34  ;;  %v1785_v45 = vmul.f32 %v1773_v26, %v3224_v35 }
 0x561   : > { %1806 = vst [vmem:[%s3293_s29 + $0x10] sm:$0xff] %v1798_v5  ;;  %1807 = vst [vmem:[%s3293_s29 + $0x18] sm:$0xff] %v1799_v25  ;;  %v1786_v8 = vmul.f32 %v1778_v21, %v3228_v54  ;;  %v1787_v23 = vmul.f32 %v1778_v21, %v3230_v40 }
 0x562   : > { %1804 = vst [vmem:[%s3293_s29] sm:$0xff] %v1796_v4  ;;  %1805 = vst [vmem:[%s3293_s29 + $0x8] sm:$0xff] %v1797_v22  ;;  %v1792_v11 = vadd.f32 %v2052_v27, %v1784_v42  ;;  %v1793_v63 = vadd.f32 %v2053_v55, %v1785_v45 }
 0x563   : > { %v1794_v34 = vadd.f32 %v2054_v60, %v1786_v8  ;;  %v1795_v35 = vadd.f32 %v2055_v61, %v1787_v23 }
 0x564   : > { %v1800_v33 = vmax.f32 %v1792_v11, 0.0  ;;  %v1801_v47 = vmax.f32 %v1793_v63, 0.0 }
 0x565   : > { %v1802_v48 = vmax.f32 %v1794_v34, 0.0  ;;  %v1803_v54 = vmax.f32 %v1795_v35, 0.0 }
 0x566   : > { %1808 = vst [vmem:[%s3293_s29 + $0x20] sm:$0xff] %v1800_v33  ;;  %1809 = vst [vmem:[%s3293_s29 + $0x28] sm:$0xff] %v1801_v47 }
 0x567   : > { %1810 = vst [vmem:[%s3293_s29 + $0x30] sm:$0xff] %v1802_v48  ;;  %1811 = vst [vmem:[%s3293_s29 + $0x38] sm:$0xff] %v1803_v54 }
 0x568 PF: > { %s19_s30 = sadd.s32 1, %s2062_s30  }
 0x569   : > { %p16_p4 = scmp.ge.s32.totalorder %s19_s30, 4  }
 0x56b   :  { %18 = sbr.rel (!%p16_p4) target bundleno = 1 (0x1), region = 86 }

</bundles_post_ra>
